<compile_context>
chip_gen: v6e
topology: v6e:2x2x1
jax: 0.10.0
libtpu: 0.0.40
codegen_flags: <defaults>
</compile_context>

<pallas_src>
import math
from functools import partial

import jax
import jax.numpy as jnp
from jax import lax
from jax.experimental import pallas as pl
from jax.experimental.pallas import tpu as pltpu


# ----------------------------- in-kernel helpers -----------------------------
def _layernorm(x, w, b, eps=1e-5):
    mu = jnp.mean(x, axis=-1, keepdims=True)
    xc = x - mu
    var = jnp.mean(xc * xc, axis=-1, keepdims=True)
    return xc * lax.rsqrt(var + eps) * w + b


def _linear(x2d, w, b=None):
    # weights are stored (in, out) -> plain MXU matmul, no transposes in the kernel
    y = jnp.dot(x2d, w, preferred_element_type=jnp.float32)
    if b is not None:
        y = y + b
    return y


# --------------------- fully fused ViT forward kernel -------------------------
# grid = (batch_block, layer); tok_ref (VMEM scratch) is the carried token state.
def _vit_kernel(patches_ref, conv_w_ref, clspos_ref, lnpre_w_ref, lnpre_b_ref,
                ln1_w, ln1_b, in_w, in_b, out_w, out_b,
                ln2_w, ln2_b, fc_w, fc_b, pj_w, pj_b,
                aln_w, aln_b, dn_w, dn_b, up_w, up_b,
                lnpost_w_ref, lnpost_b_ref, proj_ref,
                head_ref, tok_ref,
                *, num_heads, seq_len, adapter_scale):
    BB, L_pad, D = tok_ref.shape
    P = patches_ref.shape[-1]
    BL = BB * L_pad
    H = num_heads
    hd = D // H
    scale = 1.0 / math.sqrt(hd)
    layer = pl.program_id(1)

    # ---- layer step 0: fused patch-embed + cls token + pos embedding + ln_pre ----
    # patches are zero-padded so patch g already sits at token row g+1; cls token and
    # positional embedding are folded into the additive clspos slab -> one matmul,
    # one add, one layernorm, one dense store.
    @pl.when(layer == 0)
    def _embed():
        pe = jnp.dot(patches_ref[...].reshape(BL, P), conv_w_ref[...],
                     preferred_element_type=jnp.float32)
        t = pe.reshape(BB, L_pad, D) + clspos_ref[...]
        tok_ref[...] = _layernorm(t, lnpre_w_ref[...], lnpre_b_ref[...])

    x = tok_ref[...].reshape(BL, D)                             # carried state (BL, D)

    # ---- multi-head self-attention on ln_1(x) ----
    h = _layernorm(x, ln1_w[0], ln1_b[0])
    qkv = _linear(h, in_w[0], in_b[0])                          # (BL, 3D), one matmul
    qkv3 = qkv.reshape(BB, L_pad, 3 * D)
    key_valid = lax.broadcasted_iota(jnp.int32, (1, 1, L_pad), 2) < seq_len
    ctx_parts = []
    for hi in range(H):                                         # heads unrolled (static)
        q = qkv3[:, :, hi * hd:(hi + 1) * hd]
        k = qkv3[:, :, D + hi * hd:D + (hi + 1) * hd]
        v = qkv3[:, :, 2 * D + hi * hd:2 * D + (hi + 1) * hd]
        s = jnp.einsum('bqd,bkd->bqk', q, k,
                       preferred_element_type=jnp.float32) * scale
        s = jnp.where(key_valid, s, -1e30)                      # mask padded key columns
        s = s - jnp.max(s, axis=-1, keepdims=True)
        p = jnp.exp(s)
        p = p * pl.reciprocal(jnp.sum(p, axis=-1, keepdims=True), approx=True)
        ctx_parts.append(jnp.einsum('bqk,bkd->bqd', p, v,
                                    preferred_element_type=jnp.float32))
    ctx = jnp.concatenate(ctx_parts, axis=-1).reshape(BL, D)
    x = x + _linear(ctx, out_w[0], out_b[0])                    # ONE out-proj matmul, K = D

    # ---- adapter branch on the post-attention residual ----
    a = _layernorm(x, aln_w[0], aln_b[0])
    down = jnp.maximum(_linear(a, dn_w[0], dn_b[0]), 0.0)
    adapt = _linear(down, up_w[0], up_b[0]) * adapter_scale
    # TODO(synk): adapter dropout(p=0.1) is identity in eval mode.

    # ---- MLP with QuickGELU on ln_2(x) ----
    m = _layernorm(x, ln2_w[0], ln2_b[0])
    h1 = _linear(m, fc_w[0], fc_b[0])
    g = h1 * jax.nn.sigmoid(1.702 * h1)
    x = x + _linear(g, pj_w[0], pj_b[0]) + adapt
    tok_ref[...] = x.reshape(BB, L_pad, D)

    # ---- last layer step: fused ln_post(cls token) @ proj head ----
    @pl.when(layer == pl.num_programs(1) - 1)
    def _head():
        cls_tok = x.reshape(BB, L_pad, D)[:, 0:1, :].reshape(BB, D)
        hh = _layernorm(cls_tok, lnpost_w_ref[...], lnpost_b_ref[...])
        head_ref[...] = jnp.dot(hh, proj_ref[...], preferred_element_type=jnp.float32)


# --------------------------------- wrapper ------------------------------------
def vision_transformer_forward(x, params, *, patch_size, heads, batch_block=8):
    B, C, Hh, Ww = x.shape
    P, D = params['conv_w'].shape
    gh, gw = Hh // patch_size, Ww // patch_size
    G = gh * gw
    assert P == C * patch_size * patch_size
    L = G + 1
    L_pad = ((L + 7) // 8) * 8                   # sublane-aligned sequence length
    NL = params['in_w'].shape[0]
    O = params['proj'].shape[1]

    BB = min(batch_block, B)                     # batch elements per grid step
    nb = pl.cdiv(B, BB)
    B_pad = nb * BB

    # conv1 (stride == kernel, no bias) == patch extraction + matmul (layout glue).
    # Row 0 of each image is left zero (cls-token slot); trailing rows zero-pad to L_pad.
    patches = x.reshape(B, C, gh, patch_size, gw, patch_size)
    patches = patches.transpose(0, 2, 4, 1, 3, 5).reshape(B, G, P)
    patches = jnp.pad(patches, ((0, B_pad - B), (1, L_pad - 1 - G), (0, 0)))

    # class token + positional embedding folded into one additive (L_pad, D) slab.
    cls_pos = jnp.pad(params['pos'], ((0, L_pad - L), (0, 0)))
    cls_pos = cls_pos.at[0, :].add(params['cls'])

    layer_names = ['ln1_w', 'ln1_b', 'in_w', 'in_b', 'out_w', 'out_b',
                   'ln2_w', 'ln2_b', 'fc_w', 'fc_b', 'pj_w', 'pj_b',
                   'aln_w', 'aln_b', 'dn_w', 'dn_b', 'up_w', 'up_b']
    layer_params = [params[n] for n in layer_names]

    const = lambda shape: pl.BlockSpec(shape, lambda b, l: (0,) * len(shape))
    in_specs = (
        [pl.BlockSpec((BB, L_pad, P), lambda b, l: (b, 0, 0)),   # patches: per batch block
         const((P, D)),                                          # conv weight (resident)
         const((L_pad, D)),                                      # cls + pos slab
         const((1, D)), const((1, D))]                           # ln_pre w/b
        + [pl.BlockSpec((1,) + p.shape[1:], lambda b, l: (l, 0, 0))   # per-layer weights
           for p in layer_params]
        + [const((1, D)), const((1, D)),                         # ln_post w/b
           const((D, O))]                                        # proj
    )
    out_specs = pl.BlockSpec((BB, O), lambda b, l: (b, 0))       # final head output
    out_shape = jax.ShapeDtypeStruct((B_pad, O), jnp.float32)

    head = pl.pallas_call(
        partial(_vit_kernel, num_heads=heads, seq_len=L, adapter_scale=0.1),
        grid=(nb, NL),
        in_specs=in_specs,
        out_specs=out_specs,
        out_shape=out_shape,
        scratch_shapes=[pltpu.VMEM((BB, L_pad, D), jnp.float32)],   # carried token state
        compiler_params=pltpu.CompilerParams(
            dimension_semantics=("parallel", "arbitrary")),
    )(patches, params['conv_w'], cls_pos, params['ln_pre_w'], params['ln_pre_b'],
      *layer_params, params['ln_post_w'], params['ln_post_b'], params['proj'])

    return head[:B]


# ------------------------------ parameter init --------------------------------
# Linear weights are stored (in, out) -- i.e. torch nn.Linear's W.T -- so the kernel
# never has to transpose on the MXU.  The forward math is identical to the PyTorch module.
def init_params(key, *, width, layers, patch_size, resolution, output_dim):
    D = width
    P = 3 * patch_size * patch_size
    G = (resolution // patch_size) ** 2
    it = iter(jax.random.split(key, 48))

    def nrm(shape, std=0.05):
        return (std * jax.random.normal(next(it), shape)).astype(jnp.float32)

    def ln_pair(shape):
        return 1.0 + nrm(shape, 0.02), nrm(shape, 0.02)

    scale = D ** -0.5
    p = {}
    p['conv_w'] = nrm((P, D))                    # conv1 weight, reshaped+transposed to (C*ps*ps, D)
    p['cls'] = (scale * jax.random.normal(next(it), (D,))).astype(jnp.float32)
    p['pos'] = (scale * jax.random.normal(next(it), (G + 1, D))).astype(jnp.float32)
    p['ln_pre_w'], p['ln_pre_b'] = ln_pair((1, D))
    # per-layer params stacked with a leading `layers` dim
    p['ln1_w'], p['ln1_b'] = ln_pair((layers, 1, D))
    p['in_w'] = nrm((layers, D, 3 * D))          # attn in_proj (qkv)
    p['in_b'] = nrm((layers, 1, 3 * D))
    p['out_w'] = nrm((layers, D, D))             # attn out_proj
    p['out_b'] = nrm((layers, 1, D))
    p['ln2_w'], p['ln2_b'] = ln_pair((layers, 1, D))
    p['fc_w'] = nrm((layers, D, 4 * D))          # mlp c_fc
    p['fc_b'] = nrm((layers, 1, 4 * D))
    p['pj_w'] = nrm((layers, 4 * D, D))          # mlp c_proj
    p['pj_b'] = nrm((layers, 1, D))
    p['aln_w'], p['aln_b'] = ln_pair((layers, 1, D))
    p['dn_w'] = nrm((layers, D, 64))             # adapter down_proj
    p['dn_b'] = nrm((layers, 1, 64))
    p['up_w'] = nrm((layers, 64, D))             # adapter up_proj
    p['up_b'] = nrm((layers, 1, D))
    p['ln_post_w'], p['ln_post_b'] = ln_pair((1, D))
    p['proj'] = (scale * jax.random.normal(next(it), (D, output_dim))).astype(jnp.float32)
    return p


if __name__ == "__main__":
    B, resolution, patch_size = 2, 16, 8
    width, layers, heads, output_dim = 32, 2, 4, 16

    key = jax.random.PRNGKey(0)
    kx, kp = jax.random.split(key)
    x = jax.random.normal(kx, (B, 3, resolution, resolution), dtype=jnp.float32)
    params = init_params(kp, width=width, layers=layers, patch_size=patch_size,
                         resolution=resolution, output_dim=output_dim)

    out = vision_transformer_forward(x, params, patch_size=patch_size, heads=heads)
    out = jax.block_until_ready(out)
    assert out.shape == (B, output_dim), out.shape
    assert bool(jnp.all(jnp.isfinite(out)))
    print("KERNEL_OK")
</pallas_src>

<mosaic_0001>
module attributes {stable_mosaic.version = 11 : i64} {
  func.func @_vit_kernel(%arg0: i32, %arg1: i32, %arg2: memref<2x8x192xf32, #tpu.memory_space<vmem>>, %arg3: memref<192x32xf32, #tpu.memory_space<vmem>>, %arg4: memref<8x32xf32, #tpu.memory_space<vmem>>, %arg5: memref<1x32xf32, #tpu.memory_space<vmem>>, %arg6: memref<1x32xf32, #tpu.memory_space<vmem>>, %arg7: memref<1x1x32xf32, #tpu.memory_space<vmem>>, %arg8: memref<1x1x32xf32, #tpu.memory_space<vmem>>, %arg9: memref<1x32x96xf32, #tpu.memory_space<vmem>>, %arg10: memref<1x1x96xf32, #tpu.memory_space<vmem>>, %arg11: memref<1x32x32xf32, #tpu.memory_space<vmem>>, %arg12: memref<1x1x32xf32, #tpu.memory_space<vmem>>, %arg13: memref<1x1x32xf32, #tpu.memory_space<vmem>>, %arg14: memref<1x1x32xf32, #tpu.memory_space<vmem>>, %arg15: memref<1x32x128xf32, #tpu.memory_space<vmem>>, %arg16: memref<1x1x128xf32, #tpu.memory_space<vmem>>, %arg17: memref<1x128x32xf32, #tpu.memory_space<vmem>>, %arg18: memref<1x1x32xf32, #tpu.memory_space<vmem>>, %arg19: memref<1x1x32xf32, #tpu.memory_space<vmem>>, %arg20: memref<1x1x32xf32, #tpu.memory_space<vmem>>, %arg21: memref<1x32x64xf32, #tpu.memory_space<vmem>>, %arg22: memref<1x1x64xf32, #tpu.memory_space<vmem>>, %arg23: memref<1x64x32xf32, #tpu.memory_space<vmem>>, %arg24: memref<1x1x32xf32, #tpu.memory_space<vmem>>, %arg25: memref<1x32xf32, #tpu.memory_space<vmem>>, %arg26: memref<1x32xf32, #tpu.memory_space<vmem>>, %arg27: memref<32x16xf32, #tpu.memory_space<vmem>>, %arg28: memref<2x16xf32, #tpu.memory_space<vmem>>, %arg29: memref<2x8x32xf32, #tpu.memory_space<vmem>>) attributes {dimension_semantics = [#tpu.dimension_semantics<parallel>, #tpu.dimension_semantics<arbitrary>], iteration_bounds = array<i64: 1, 2>, scalar_prefetch = 0 : i64, scratch_operands = 1 : i64, tpu.core_type = #tpu.core_type<tc>, window_params = [{transform_indices = @transform_0, window_bounds = array<i64: 2, 8, 192>}, {pipeline_mode = #tpu.pipeline_mode<synchronous>, transform_indices = @transform_1, window_bounds = array<i64: 192, 32>}, {pipeline_mode = #tpu.pipeline_mode<synchronous>, transform_indices = @transform_2, window_bounds = array<i64: 8, 32>}, {pipeline_mode = #tpu.pipeline_mode<synchronous>, transform_indices = @transform_3, window_bounds = array<i64: 1, 32>}, {pipeline_mode = #tpu.pipeline_mode<synchronous>, transform_indices = @transform_4, window_bounds = array<i64: 1, 32>}, {transform_indices = @transform_5, window_bounds = array<i64: 1, 1, 32>}, {transform_indices = @transform_6, window_bounds = array<i64: 1, 1, 32>}, {transform_indices = @transform_7, window_bounds = array<i64: 1, 32, 96>}, {transform_indices = @transform_8, window_bounds = array<i64: 1, 1, 96>}, {transform_indices = @transform_9, window_bounds = array<i64: 1, 32, 32>}, {transform_indices = @transform_10, window_bounds = array<i64: 1, 1, 32>}, {transform_indices = @transform_11, window_bounds = array<i64: 1, 1, 32>}, {transform_indices = @transform_12, window_bounds = array<i64: 1, 1, 32>}, {transform_indices = @transform_13, window_bounds = array<i64: 1, 32, 128>}, {transform_indices = @transform_14, window_bounds = array<i64: 1, 1, 128>}, {transform_indices = @transform_15, window_bounds = array<i64: 1, 128, 32>}, {transform_indices = @transform_16, window_bounds = array<i64: 1, 1, 32>}, {transform_indices = @transform_17, window_bounds = array<i64: 1, 1, 32>}, {transform_indices = @transform_18, window_bounds = array<i64: 1, 1, 32>}, {transform_indices = @transform_19, window_bounds = array<i64: 1, 32, 64>}, {transform_indices = @transform_20, window_bounds = array<i64: 1, 1, 64>}, {transform_indices = @transform_21, window_bounds = array<i64: 1, 64, 32>}, {transform_indices = @transform_22, window_bounds = array<i64: 1, 1, 32>}, {pipeline_mode = #tpu.pipeline_mode<synchronous>, transform_indices = @transform_23, window_bounds = array<i64: 1, 32>}, {pipeline_mode = #tpu.pipeline_mode<synchronous>, transform_indices = @transform_24, window_bounds = array<i64: 1, 32>}, {pipeline_mode = #tpu.pipeline_mode<synchronous>, transform_indices = @transform_25, window_bounds = array<i64: 32, 16>}, {transform_indices = @transform_26, window_bounds = array<i64: 2, 16>}]} {
    %c0_i32 = arith.constant 0 : i32
    %0 = arith.cmpi eq, %arg1, %c0_i32 : i32
    %1 = arith.extui %0 : i1 to i32
    %c0_i32_0 = arith.constant 0 : i32
    %2 = arith.cmpi ne, %1, %c0_i32_0 : i32
    scf.if %2 {
      %c0_109 = arith.constant 0 : index
      %c0_110 = arith.constant 0 : index
      %c0_111 = arith.constant 0 : index
      %229 = vector.load %arg2[%c0_109, %c0_110, %c0_111] : memref<2x8x192xf32, #tpu.memory_space<vmem>>, vector<2x8x192xf32>
      %230 = vector.shape_cast %229 : vector<2x8x192xf32> to vector<16x192xf32>
      %c0_112 = arith.constant 0 : index
      %c0_113 = arith.constant 0 : index
      %231 = vector.load %arg3[%c0_112, %c0_113] : memref<192x32xf32, #tpu.memory_space<vmem>>, vector<192x32xf32>
      %cst_114 = arith.constant dense<0.000000e+00> : vector<16x32xf32>
      %232 = tpu.matmul %230, %231, %cst_114 {dimension_numbers = #tpu.dot_dimension_numbers<[1], [0], [0], [1], [0, 0, 1, 1], [], []>} : vector<16x192xf32>, vector<192x32xf32>, vector<16x32xf32> -> vector<16x32xf32>
      %233 = vector.shape_cast %232 : vector<16x32xf32> to vector<2x8x32xf32>
      %c0_115 = arith.constant 0 : index
      %c0_116 = arith.constant 0 : index
      %234 = vector.load %arg4[%c0_115, %c0_116] : memref<8x32xf32, #tpu.memory_space<vmem>>, vector<8x32xf32>
      %235 = vector.shape_cast %234 : vector<8x32xf32> to vector<1x8x32xf32>
      %236 = vector.broadcast %235 : vector<1x8x32xf32> to vector<2x8x32xf32>
      %237 = arith.addf %233, %236 : vector<2x8x32xf32>
      %c0_117 = arith.constant 0 : index
      %c0_118 = arith.constant 0 : index
      %238 = vector.load %arg5[%c0_117, %c0_118] : memref<1x32xf32, #tpu.memory_space<vmem>>, vector<1x32xf32>
      %c0_119 = arith.constant 0 : index
      %c0_120 = arith.constant 0 : index
      %239 = vector.load %arg6[%c0_119, %c0_120] : memref<1x32xf32, #tpu.memory_space<vmem>>, vector<1x32xf32>
      %cst_121 = arith.constant dense<0.000000e+00> : vector<2x8xf32>
      %240 = vector.multi_reduction <add>, %237, %cst_121 [2] : vector<2x8x32xf32> to vector<2x8xf32>
      %241 = vector.shape_cast %240 : vector<2x8xf32> to vector<2x8x1xf32>
      %cst_122 = arith.constant 3.200000e+01 : f32
      %242 = vector.broadcast %cst_122 : f32 to vector<2x8x1xf32>
      %243 = arith.divf %241, %242 : vector<2x8x1xf32>
      %244 = vector.broadcast %243 : vector<2x8x1xf32> to vector<2x8x32xf32>
      %245 = arith.subf %237, %244 : vector<2x8x32xf32>
      %246 = arith.mulf %245, %245 : vector<2x8x32xf32>
      %cst_123 = arith.constant dense<0.000000e+00> : vector<2x8xf32>
      %247 = vector.multi_reduction <add>, %246, %cst_123 [2] : vector<2x8x32xf32> to vector<2x8xf32>
      %248 = vector.shape_cast %247 : vector<2x8xf32> to vector<2x8x1xf32>
      %cst_124 = arith.constant 3.200000e+01 : f32
      %249 = vector.broadcast %cst_124 : f32 to vector<2x8x1xf32>
      %250 = arith.divf %248, %249 : vector<2x8x1xf32>
      %cst_125 = arith.constant 9.99999974E-6 : f32
      %251 = vector.broadcast %cst_125 : f32 to vector<2x8x1xf32>
      %252 = arith.addf %250, %251 : vector<2x8x1xf32>
      %253 = math.rsqrt %252 : vector<2x8x1xf32>
      %254 = vector.broadcast %253 : vector<2x8x1xf32> to vector<2x8x32xf32>
      %255 = arith.mulf %245, %254 : vector<2x8x32xf32>
      %256 = vector.shape_cast %238 : vector<1x32xf32> to vector<1x1x32xf32>
      %257 = vector.broadcast %256 : vector<1x1x32xf32> to vector<2x8x32xf32>
      %258 = arith.mulf %255, %257 : vector<2x8x32xf32>
      %259 = vector.shape_cast %239 : vector<1x32xf32> to vector<1x1x32xf32>
      %260 = vector.broadcast %259 : vector<1x1x32xf32> to vector<2x8x32xf32>
      %261 = arith.addf %258, %260 : vector<2x8x32xf32>
      %c0_126 = arith.constant 0 : index
      %c0_127 = arith.constant 0 : index
      %c0_128 = arith.constant 0 : index
      %262 = vector.load %arg29[%c0_126, %c0_127, %c0_128] : memref<2x8x32xf32, #tpu.memory_space<vmem>>, vector<2x8x32xf32>
      tpu.vector_store %arg29[%c0_126, %c0_127, %c0_128], %261 {strides = array<i32>} : memref<2x8x32xf32, #tpu.memory_space<vmem>>, vector<2x8x32xf32>,
    } else {
    }
    %c0 = arith.constant 0 : index
    %c0_1 = arith.constant 0 : index
    %c0_2 = arith.constant 0 : index
    %3 = vector.load %arg29[%c0, %c0_1, %c0_2] : memref<2x8x32xf32, #tpu.memory_space<vmem>>, vector<2x8x32xf32>
    %4 = vector.shape_cast %3 : vector<2x8x32xf32> to vector<16x32xf32>
    %c0_3 = arith.constant 0 : index
    %c0_4 = arith.constant 0 : index
    %c0_5 = arith.constant 0 : index
    %5 = vector.load %arg7[%c0_3, %c0_4, %c0_5] : memref<1x1x32xf32, #tpu.memory_space<vmem>>, vector<1x1x32xf32>
    %6 = vector.shape_cast %5 : vector<1x1x32xf32> to vector<1x32xf32>
    %c0_6 = arith.constant 0 : index
    %c0_7 = arith.constant 0 : index
    %c0_8 = arith.constant 0 : index
    %7 = vector.load %arg8[%c0_6, %c0_7, %c0_8] : memref<1x1x32xf32, #tpu.memory_space<vmem>>, vector<1x1x32xf32>
    %8 = vector.shape_cast %7 : vector<1x1x32xf32> to vector<1x32xf32>
    %cst = arith.constant dense<0.000000e+00> : vector<16xf32>
    %9 = vector.multi_reduction <add>, %4, %cst [1] : vector<16x32xf32> to vector<16xf32>
    %10 = vector.shape_cast %9 : vector<16xf32> to vector<16x1xf32>
    %cst_9 = arith.constant 3.200000e+01 : f32
    %11 = vector.broadcast %cst_9 : f32 to vector<16x1xf32>
    %12 = arith.divf %10, %11 : vector<16x1xf32>
    %13 = vector.broadcast %12 : vector<16x1xf32> to vector<16x32xf32>
    %14 = arith.subf %4, %13 : vector<16x32xf32>
    %15 = arith.mulf %14, %14 : vector<16x32xf32>
    %cst_10 = arith.constant dense<0.000000e+00> : vector<16xf32>
    %16 = vector.multi_reduction <add>, %15, %cst_10 [1] : vector<16x32xf32> to vector<16xf32>
    %17 = vector.shape_cast %16 : vector<16xf32> to vector<16x1xf32>
    %cst_11 = arith.constant 3.200000e+01 : f32
    %18 = vector.broadcast %cst_11 : f32 to vector<16x1xf32>
    %19 = arith.divf %17, %18 : vector<16x1xf32>
    %cst_12 = arith.constant 9.99999974E-6 : f32
    %20 = vector.broadcast %cst_12 : f32 to vector<16x1xf32>
    %21 = arith.addf %19, %20 : vector<16x1xf32>
    %22 = math.rsqrt %21 : vector<16x1xf32>
    %23 = vector.broadcast %22 : vector<16x1xf32> to vector<16x32xf32>
    %24 = arith.mulf %14, %23 : vector<16x32xf32>
    %25 = vector.broadcast %6 : vector<1x32xf32> to vector<16x32xf32>
    %26 = arith.mulf %24, %25 : vector<16x32xf32>
    %27 = vector.broadcast %8 : vector<1x32xf32> to vector<16x32xf32>
    %28 = arith.addf %26, %27 : vector<16x32xf32>
    %c0_13 = arith.constant 0 : index
    %c0_14 = arith.constant 0 : index
    %c0_15 = arith.constant 0 : index
    %29 = vector.load %arg9[%c0_13, %c0_14, %c0_15] : memref<1x32x96xf32, #tpu.memory_space<vmem>>, vector<1x32x96xf32>
    %30 = vector.shape_cast %29 : vector<1x32x96xf32> to vector<32x96xf32>
    %c0_16 = arith.constant 0 : index
    %c0_17 = arith.constant 0 : index
    %c0_18 = arith.constant 0 : index
    %31 = vector.load %arg10[%c0_16, %c0_17, %c0_18] : memref<1x1x96xf32, #tpu.memory_space<vmem>>, vector<1x1x96xf32>
    %32 = vector.shape_cast %31 : vector<1x1x96xf32> to vector<1x96xf32>
    %cst_19 = arith.constant dense<0.000000e+00> : vector<16x96xf32>
    %33 = tpu.matmul %28, %30, %cst_19 {dimension_numbers = #tpu.dot_dimension_numbers<[1], [0], [0], [1], [0, 0, 1, 1], [], []>} : vector<16x32xf32>, vector<32x96xf32>, vector<16x96xf32> -> vector<16x96xf32>
    %34 = vector.broadcast %32 : vector<1x96xf32> to vector<16x96xf32>
    %35 = arith.addf %33, %34 : vector<16x96xf32>
    %36 = vector.shape_cast %35 : vector<16x96xf32> to vector<2x8x96xf32>
    %37 = tpu.iota {dimensions = array<i32: 2>} : vector<1x1x8xi32>
    %c5_i32 = arith.constant 5 : i32
    %38 = vector.broadcast %c5_i32 : i32 to vector<1x1x8xi32>
    %39 = arith.cmpi slt, %37, %38 : vector<1x1x8xi32>
    %40 = vector.extract_strided_slice %36 {offsets = [0, 0, 0], sizes = [2, 8, 8], strides = [1, 1, 1]} : vector<2x8x96xf32> to vector<2x8x8xf32>
    %41 = vector.extract_strided_slice %36 {offsets = [0, 0, 32], sizes = [2, 8, 8], strides = [1, 1, 1]} : vector<2x8x96xf32> to vector<2x8x8xf32>
    %42 = vector.extract_strided_slice %36 {offsets = [0, 0, 64], sizes = [2, 8, 8], strides = [1, 1, 1]} : vector<2x8x96xf32> to vector<2x8x8xf32>
    "tpu.trace_start"() <{level = 10 : i32, message = "bqd,bkd->bqk"}> : () -> ()
    %cst_20 = arith.constant dense<0.000000e+00> : vector<2x8x8xf32>
    %43 = tpu.matmul %40, %41, %cst_20 {dimension_numbers = #tpu.dot_dimension_numbers<[2], [2], [1], [1], [0, 0, 0, 1, 1, 1], [0], [0]>} : vector<2x8x8xf32>, vector<2x8x8xf32>, vector<2x8x8xf32> -> vector<2x8x8xf32>
    "tpu.trace_stop"() : () -> ()
    %cst_21 = arith.constant 0.353553385 : f32
    %44 = vector.broadcast %cst_21 : f32 to vector<2x8x8xf32>
    %45 = arith.mulf %43, %44 : vector<2x8x8xf32>
    %cst_22 = arith.constant -1.000000e+30 : f32
    %46 = vector.shape_cast %39 : vector<1x1x8xi1> to vector<1x1x8xi1>
    %47 = vector.broadcast %46 : vector<1x1x8xi1> to vector<2x8x8xi1>
    %48 = vector.broadcast %cst_22 : f32 to vector<2x8x8xf32>
    %49 = arith.select %47, %45, %48 : vector<2x8x8xi1>, vector<2x8x8xf32>
    %cst_23 = arith.constant dense<0xFF800000> : vector<2x8xf32>
    %50 = vector.multi_reduction <maximumf>, %49, %cst_23 [2] : vector<2x8x8xf32> to vector<2x8xf32>
    %51 = vector.shape_cast %50 : vector<2x8xf32> to vector<2x8x1xf32>
    %52 = vector.broadcast %51 : vector<2x8x1xf32> to vector<2x8x8xf32>
    %53 = arith.subf %49, %52 : vector<2x8x8xf32>
    %54 = math.exp %53 : vector<2x8x8xf32>
    %cst_24 = arith.constant dense<0.000000e+00> : vector<2x8xf32>
    %55 = vector.multi_reduction <add>, %54, %cst_24 [2] : vector<2x8x8xf32> to vector<2x8xf32>
    %56 = vector.shape_cast %55 : vector<2x8xf32> to vector<2x8x1xf32>
    %57 = tpu.reciprocal %56 {approx = true} : vector<2x8x1xf32> -> vector<2x8x1xf32>
    %58 = vector.broadcast %57 : vector<2x8x1xf32> to vector<2x8x8xf32>
    %59 = arith.mulf %54, %58 : vector<2x8x8xf32>
    "tpu.trace_start"() <{level = 10 : i32, message = "bqk,bkd->bqd"}> : () -> ()
    %cst_25 = arith.constant dense<0.000000e+00> : vector<2x8x8xf32>
    %60 = tpu.matmul %59, %42, %cst_25 {dimension_numbers = #tpu.dot_dimension_numbers<[2], [1], [1], [2], [0, 0, 0, 1, 1, 2], [0], [0]>} : vector<2x8x8xf32>, vector<2x8x8xf32>, vector<2x8x8xf32> -> vector<2x8x8xf32>
    "tpu.trace_stop"() : () -> ()
    %61 = vector.extract_strided_slice %36 {offsets = [0, 0, 8], sizes = [2, 8, 8], strides = [1, 1, 1]} : vector<2x8x96xf32> to vector<2x8x8xf32>
    %62 = vector.extract_strided_slice %36 {offsets = [0, 0, 40], sizes = [2, 8, 8], strides = [1, 1, 1]} : vector<2x8x96xf32> to vector<2x8x8xf32>
    %63 = vector.extract_strided_slice %36 {offsets = [0, 0, 72], sizes = [2, 8, 8], strides = [1, 1, 1]} : vector<2x8x96xf32> to vector<2x8x8xf32>
    "tpu.trace_start"() <{level = 10 : i32, message = "bqd,bkd->bqk"}> : () -> ()
    %cst_26 = arith.constant dense<0.000000e+00> : vector<2x8x8xf32>
    %64 = tpu.matmul %61, %62, %cst_26 {dimension_numbers = #tpu.dot_dimension_numbers<[2], [2], [1], [1], [0, 0, 0, 1, 1, 1], [0], [0]>} : vector<2x8x8xf32>, vector<2x8x8xf32>, vector<2x8x8xf32> -> vector<2x8x8xf32>
    "tpu.trace_stop"() : () -> ()
    %cst_27 = arith.constant 0.353553385 : f32
    %65 = vector.broadcast %cst_27 : f32 to vector<2x8x8xf32>
    %66 = arith.mulf %64, %65 : vector<2x8x8xf32>
    %cst_28 = arith.constant -1.000000e+30 : f32
    %67 = vector.shape_cast %39 : vector<1x1x8xi1> to vector<1x1x8xi1>
    %68 = vector.broadcast %67 : vector<1x1x8xi1> to vector<2x8x8xi1>
    %69 = vector.broadcast %cst_28 : f32 to vector<2x8x8xf32>
    %70 = arith.select %68, %66, %69 : vector<2x8x8xi1>, vector<2x8x8xf32>
    %cst_29 = arith.constant dense<0xFF800000> : vector<2x8xf32>
    %71 = vector.multi_reduction <maximumf>, %70, %cst_29 [2] : vector<2x8x8xf32> to vector<2x8xf32>
    %72 = vector.shape_cast %71 : vector<2x8xf32> to vector<2x8x1xf32>
    %73 = vector.broadcast %72 : vector<2x8x1xf32> to vector<2x8x8xf32>
    %74 = arith.subf %70, %73 : vector<2x8x8xf32>
    %75 = math.exp %74 : vector<2x8x8xf32>
    %cst_30 = arith.constant dense<0.000000e+00> : vector<2x8xf32>
    %76 = vector.multi_reduction <add>, %75, %cst_30 [2] : vector<2x8x8xf32> to vector<2x8xf32>
    %77 = vector.shape_cast %76 : vector<2x8xf32> to vector<2x8x1xf32>
    %78 = tpu.reciprocal %77 {approx = true} : vector<2x8x1xf32> -> vector<2x8x1xf32>
    %79 = vector.broadcast %78 : vector<2x8x1xf32> to vector<2x8x8xf32>
    %80 = arith.mulf %75, %79 : vector<2x8x8xf32>
    "tpu.trace_start"() <{level = 10 : i32, message = "bqk,bkd->bqd"}> : () -> ()
    %cst_31 = arith.constant dense<0.000000e+00> : vector<2x8x8xf32>
    %81 = tpu.matmul %80, %63, %cst_31 {dimension_numbers = #tpu.dot_dimension_numbers<[2], [1], [1], [2], [0, 0, 0, 1, 1, 2], [0], [0]>} : vector<2x8x8xf32>, vector<2x8x8xf32>, vector<2x8x8xf32> -> vector<2x8x8xf32>
    "tpu.trace_stop"() : () -> ()
    %82 = vector.extract_strided_slice %36 {offsets = [0, 0, 16], sizes = [2, 8, 8], strides = [1, 1, 1]} : vector<2x8x96xf32> to vector<2x8x8xf32>
    %83 = vector.extract_strided_slice %36 {offsets = [0, 0, 48], sizes = [2, 8, 8], strides = [1, 1, 1]} : vector<2x8x96xf32> to vector<2x8x8xf32>
    %84 = vector.extract_strided_slice %36 {offsets = [0, 0, 80], sizes = [2, 8, 8], strides = [1, 1, 1]} : vector<2x8x96xf32> to vector<2x8x8xf32>
    "tpu.trace_start"() <{level = 10 : i32, message = "bqd,bkd->bqk"}> : () -> ()
    %cst_32 = arith.constant dense<0.000000e+00> : vector<2x8x8xf32>
    %85 = tpu.matmul %82, %83, %cst_32 {dimension_numbers = #tpu.dot_dimension_numbers<[2], [2], [1], [1], [0, 0, 0, 1, 1, 1], [0], [0]>} : vector<2x8x8xf32>, vector<2x8x8xf32>, vector<2x8x8xf32> -> vector<2x8x8xf32>
    "tpu.trace_stop"() : () -> ()
    %cst_33 = arith.constant 0.353553385 : f32
    %86 = vector.broadcast %cst_33 : f32 to vector<2x8x8xf32>
    %87 = arith.mulf %85, %86 : vector<2x8x8xf32>
    %cst_34 = arith.constant -1.000000e+30 : f32
    %88 = vector.shape_cast %39 : vector<1x1x8xi1> to vector<1x1x8xi1>
    %89 = vector.broadcast %88 : vector<1x1x8xi1> to vector<2x8x8xi1>
    %90 = vector.broadcast %cst_34 : f32 to vector<2x8x8xf32>
    %91 = arith.select %89, %87, %90 : vector<2x8x8xi1>, vector<2x8x8xf32>
    %cst_35 = arith.constant dense<0xFF800000> : vector<2x8xf32>
    %92 = vector.multi_reduction <maximumf>, %91, %cst_35 [2] : vector<2x8x8xf32> to vector<2x8xf32>
    %93 = vector.shape_cast %92 : vector<2x8xf32> to vector<2x8x1xf32>
    %94 = vector.broadcast %93 : vector<2x8x1xf32> to vector<2x8x8xf32>
    %95 = arith.subf %91, %94 : vector<2x8x8xf32>
    %96 = math.exp %95 : vector<2x8x8xf32>
    %cst_36 = arith.constant dense<0.000000e+00> : vector<2x8xf32>
    %97 = vector.multi_reduction <add>, %96, %cst_36 [2] : vector<2x8x8xf32> to vector<2x8xf32>
    %98 = vector.shape_cast %97 : vector<2x8xf32> to vector<2x8x1xf32>
    %99 = tpu.reciprocal %98 {approx = true} : vector<2x8x1xf32> -> vector<2x8x1xf32>
    %100 = vector.broadcast %99 : vector<2x8x1xf32> to vector<2x8x8xf32>
    %101 = arith.mulf %96, %100 : vector<2x8x8xf32>
    "tpu.trace_start"() <{level = 10 : i32, message = "bqk,bkd->bqd"}> : () -> ()
    %cst_37 = arith.constant dense<0.000000e+00> : vector<2x8x8xf32>
    %102 = tpu.matmul %101, %84, %cst_37 {dimension_numbers = #tpu.dot_dimension_numbers<[2], [1], [1], [2], [0, 0, 0, 1, 1, 2], [0], [0]>} : vector<2x8x8xf32>, vector<2x8x8xf32>, vector<2x8x8xf32> -> vector<2x8x8xf32>
    "tpu.trace_stop"() : () -> ()
    %103 = vector.extract_strided_slice %36 {offsets = [0, 0, 24], sizes = [2, 8, 8], strides = [1, 1, 1]} : vector<2x8x96xf32> to vector<2x8x8xf32>
    %104 = vector.extract_strided_slice %36 {offsets = [0, 0, 56], sizes = [2, 8, 8], strides = [1, 1, 1]} : vector<2x8x96xf32> to vector<2x8x8xf32>
    %105 = vector.extract_strided_slice %36 {offsets = [0, 0, 88], sizes = [2, 8, 8], strides = [1, 1, 1]} : vector<2x8x96xf32> to vector<2x8x8xf32>
    "tpu.trace_start"() <{level = 10 : i32, message = "bqd,bkd->bqk"}> : () -> ()
    %cst_38 = arith.constant dense<0.000000e+00> : vector<2x8x8xf32>
    %106 = tpu.matmul %103, %104, %cst_38 {dimension_numbers = #tpu.dot_dimension_numbers<[2], [2], [1], [1], [0, 0, 0, 1, 1, 1], [0], [0]>} : vector<2x8x8xf32>, vector<2x8x8xf32>, vector<2x8x8xf32> -> vector<2x8x8xf32>
    "tpu.trace_stop"() : () -> ()
    %cst_39 = arith.constant 0.353553385 : f32
    %107 = vector.broadcast %cst_39 : f32 to vector<2x8x8xf32>
    %108 = arith.mulf %106, %107 : vector<2x8x8xf32>
    %cst_40 = arith.constant -1.000000e+30 : f32
    %109 = vector.shape_cast %39 : vector<1x1x8xi1> to vector<1x1x8xi1>
    %110 = vector.broadcast %109 : vector<1x1x8xi1> to vector<2x8x8xi1>
    %111 = vector.broadcast %cst_40 : f32 to vector<2x8x8xf32>
    %112 = arith.select %110, %108, %111 : vector<2x8x8xi1>, vector<2x8x8xf32>
    %cst_41 = arith.constant dense<0xFF800000> : vector<2x8xf32>
    %113 = vector.multi_reduction <maximumf>, %112, %cst_41 [2] : vector<2x8x8xf32> to vector<2x8xf32>
    %114 = vector.shape_cast %113 : vector<2x8xf32> to vector<2x8x1xf32>
    %115 = vector.broadcast %114 : vector<2x8x1xf32> to vector<2x8x8xf32>
    %116 = arith.subf %112, %115 : vector<2x8x8xf32>
    %117 = math.exp %116 : vector<2x8x8xf32>
    %cst_42 = arith.constant dense<0.000000e+00> : vector<2x8xf32>
    %118 = vector.multi_reduction <add>, %117, %cst_42 [2] : vector<2x8x8xf32> to vector<2x8xf32>
    %119 = vector.shape_cast %118 : vector<2x8xf32> to vector<2x8x1xf32>
    %120 = tpu.reciprocal %119 {approx = true} : vector<2x8x1xf32> -> vector<2x8x1xf32>
    %121 = vector.broadcast %120 : vector<2x8x1xf32> to vector<2x8x8xf32>
    %122 = arith.mulf %117, %121 : vector<2x8x8xf32>
    "tpu.trace_start"() <{level = 10 : i32, message = "bqk,bkd->bqd"}> : () -> ()
    %cst_43 = arith.constant dense<0.000000e+00> : vector<2x8x8xf32>
    %123 = tpu.matmul %122, %105, %cst_43 {dimension_numbers = #tpu.dot_dimension_numbers<[2], [1], [1], [2], [0, 0, 0, 1, 1, 2], [0], [0]>} : vector<2x8x8xf32>, vector<2x8x8xf32>, vector<2x8x8xf32> -> vector<2x8x8xf32>
    "tpu.trace_stop"() : () -> ()
    %124 = tpu.concatenate %60, %81, %102, %123 in 2 : vector<2x8x8xf32>, vector<2x8x8xf32>, vector<2x8x8xf32>, vector<2x8x8xf32> -> vector<2x8x32xf32>
    %125 = vector.shape_cast %124 : vector<2x8x32xf32> to vector<16x32xf32>
    %c0_44 = arith.constant 0 : index
    %c0_45 = arith.constant 0 : index
    %c0_46 = arith.constant 0 : index
    %126 = vector.load %arg11[%c0_44, %c0_45, %c0_46] : memref<1x32x32xf32, #tpu.memory_space<vmem>>, vector<1x32x32xf32>
    %127 = vector.shape_cast %126 : vector<1x32x32xf32> to vector<32x32xf32>
    %c0_47 = arith.constant 0 : index
    %c0_48 = arith.constant 0 : index
    %c0_49 = arith.constant 0 : index
    %128 = vector.load %arg12[%c0_47, %c0_48, %c0_49] : memref<1x1x32xf32, #tpu.memory_space<vmem>>, vector<1x1x32xf32>
    %129 = vector.shape_cast %128 : vector<1x1x32xf32> to vector<1x32xf32>
    %cst_50 = arith.constant dense<0.000000e+00> : vector<16x32xf32>
    %130 = tpu.matmul %125, %127, %cst_50 {dimension_numbers = #tpu.dot_dimension_numbers<[1], [0], [0], [1], [0, 0, 1, 1], [], []>} : vector<16x32xf32>, vector<32x32xf32>, vector<16x32xf32> -> vector<16x32xf32>
    %131 = vector.broadcast %129 : vector<1x32xf32> to vector<16x32xf32>
    %132 = arith.addf %130, %131 : vector<16x32xf32>
    %133 = arith.addf %4, %132 : vector<16x32xf32>
    %c0_51 = arith.constant 0 : index
    %c0_52 = arith.constant 0 : index
    %c0_53 = arith.constant 0 : index
    %134 = vector.load %arg19[%c0_51, %c0_52, %c0_53] : memref<1x1x32xf32, #tpu.memory_space<vmem>>, vector<1x1x32xf32>
    %135 = vector.shape_cast %134 : vector<1x1x32xf32> to vector<1x32xf32>
    %c0_54 = arith.constant 0 : index
    %c0_55 = arith.constant 0 : index
    %c0_56 = arith.constant 0 : index
    %136 = vector.load %arg20[%c0_54, %c0_55, %c0_56] : memref<1x1x32xf32, #tpu.memory_space<vmem>>, vector<1x1x32xf32>
    %137 = vector.shape_cast %136 : vector<1x1x32xf32> to vector<1x32xf32>
    %cst_57 = arith.constant dense<0.000000e+00> : vector<16xf32>
    %138 = vector.multi_reduction <add>, %133, %cst_57 [1] : vector<16x32xf32> to vector<16xf32>
    %139 = vector.shape_cast %138 : vector<16xf32> to vector<16x1xf32>
    %cst_58 = arith.constant 3.200000e+01 : f32
    %140 = vector.broadcast %cst_58 : f32 to vector<16x1xf32>
    %141 = arith.divf %139, %140 : vector<16x1xf32>
    %142 = vector.broadcast %141 : vector<16x1xf32> to vector<16x32xf32>
    %143 = arith.subf %133, %142 : vector<16x32xf32>
    %144 = arith.mulf %143, %143 : vector<16x32xf32>
    %cst_59 = arith.constant dense<0.000000e+00> : vector<16xf32>
    %145 = vector.multi_reduction <add>, %144, %cst_59 [1] : vector<16x32xf32> to vector<16xf32>
    %146 = vector.shape_cast %145 : vector<16xf32> to vector<16x1xf32>
    %cst_60 = arith.constant 3.200000e+01 : f32
    %147 = vector.broadcast %cst_60 : f32 to vector<16x1xf32>
    %148 = arith.divf %146, %147 : vector<16x1xf32>
    %cst_61 = arith.constant 9.99999974E-6 : f32
    %149 = vector.broadcast %cst_61 : f32 to vector<16x1xf32>
    %150 = arith.addf %148, %149 : vector<16x1xf32>
    %151 = math.rsqrt %150 : vector<16x1xf32>
    %152 = vector.broadcast %151 : vector<16x1xf32> to vector<16x32xf32>
    %153 = arith.mulf %143, %152 : vector<16x32xf32>
    %154 = vector.broadcast %135 : vector<1x32xf32> to vector<16x32xf32>
    %155 = arith.mulf %153, %154 : vector<16x32xf32>
    %156 = vector.broadcast %137 : vector<1x32xf32> to vector<16x32xf32>
    %157 = arith.addf %155, %156 : vector<16x32xf32>
    %c0_62 = arith.constant 0 : index
    %c0_63 = arith.constant 0 : index
    %c0_64 = arith.constant 0 : index
    %158 = vector.load %arg21[%c0_62, %c0_63, %c0_64] : memref<1x32x64xf32, #tpu.memory_space<vmem>>, vector<1x32x64xf32>
    %159 = vector.shape_cast %158 : vector<1x32x64xf32> to vector<32x64xf32>
    %c0_65 = arith.constant 0 : index
    %c0_66 = arith.constant 0 : index
    %c0_67 = arith.constant 0 : index
    %160 = vector.load %arg22[%c0_65, %c0_66, %c0_67] : memref<1x1x64xf32, #tpu.memory_space<vmem>>, vector<1x1x64xf32>
    %161 = vector.shape_cast %160 : vector<1x1x64xf32> to vector<1x64xf32>
    %cst_68 = arith.constant dense<0.000000e+00> : vector<16x64xf32>
    %162 = tpu.matmul %157, %159, %cst_68 {dimension_numbers = #tpu.dot_dimension_numbers<[1], [0], [0], [1], [0, 0, 1, 1], [], []>} : vector<16x32xf32>, vector<32x64xf32>, vector<16x64xf32> -> vector<16x64xf32>
    %163 = vector.broadcast %161 : vector<1x64xf32> to vector<16x64xf32>
    %164 = arith.addf %162, %163 : vector<16x64xf32>
    %cst_69 = arith.constant 0.000000e+00 : f32
    %165 = vector.broadcast %cst_69 : f32 to vector<16x64xf32>
    %166 = arith.maximumf %164, %165 : vector<16x64xf32>
    %c0_70 = arith.constant 0 : index
    %c0_71 = arith.constant 0 : index
    %c0_72 = arith.constant 0 : index
    %167 = vector.load %arg23[%c0_70, %c0_71, %c0_72] : memref<1x64x32xf32, #tpu.memory_space<vmem>>, vector<1x64x32xf32>
    %168 = vector.shape_cast %167 : vector<1x64x32xf32> to vector<64x32xf32>
    %c0_73 = arith.constant 0 : index
    %c0_74 = arith.constant 0 : index
    %c0_75 = arith.constant 0 : index
    %169 = vector.load %arg24[%c0_73, %c0_74, %c0_75] : memref<1x1x32xf32, #tpu.memory_space<vmem>>, vector<1x1x32xf32>
    %170 = vector.shape_cast %169 : vector<1x1x32xf32> to vector<1x32xf32>
    %cst_76 = arith.constant dense<0.000000e+00> : vector<16x32xf32>
    %171 = tpu.matmul %166, %168, %cst_76 {dimension_numbers = #tpu.dot_dimension_numbers<[1], [0], [0], [1], [0, 0, 1, 1], [], []>} : vector<16x64xf32>, vector<64x32xf32>, vector<16x32xf32> -> vector<16x32xf32>
    %172 = vector.broadcast %170 : vector<1x32xf32> to vector<16x32xf32>
    %173 = arith.addf %171, %172 : vector<16x32xf32>
    %cst_77 = arith.constant 1.000000e-01 : f32
    %174 = vector.broadcast %cst_77 : f32 to vector<16x32xf32>
    %175 = arith.mulf %173, %174 : vector<16x32xf32>
    %c0_78 = arith.constant 0 : index
    %c0_79 = arith.constant 0 : index
    %c0_80 = arith.constant 0 : index
    %176 = vector.load %arg13[%c0_78, %c0_79, %c0_80] : memref<1x1x32xf32, #tpu.memory_space<vmem>>, vector<1x1x32xf32>
    %177 = vector.shape_cast %176 : vector<1x1x32xf32> to vector<1x32xf32>
    %c0_81 = arith.constant 0 : index
    %c0_82 = arith.constant 0 : index
    %c0_83 = arith.constant 0 : index
    %178 = vector.load %arg14[%c0_81, %c0_82, %c0_83] : memref<1x1x32xf32, #tpu.memory_space<vmem>>, vector<1x1x32xf32>
    %179 = vector.shape_cast %178 : vector<1x1x32xf32> to vector<1x32xf32>
    %cst_84 = arith.constant dense<0.000000e+00> : vector<16xf32>
    %180 = vector.multi_reduction <add>, %133, %cst_84 [1] : vector<16x32xf32> to vector<16xf32>
    %181 = vector.shape_cast %180 : vector<16xf32> to vector<16x1xf32>
    %cst_85 = arith.constant 3.200000e+01 : f32
    %182 = vector.broadcast %cst_85 : f32 to vector<16x1xf32>
    %183 = arith.divf %181, %182 : vector<16x1xf32>
    %184 = vector.broadcast %183 : vector<16x1xf32> to vector<16x32xf32>
    %185 = arith.subf %133, %184 : vector<16x32xf32>
    %186 = arith.mulf %185, %185 : vector<16x32xf32>
    %cst_86 = arith.constant dense<0.000000e+00> : vector<16xf32>
    %187 = vector.multi_reduction <add>, %186, %cst_86 [1] : vector<16x32xf32> to vector<16xf32>
    %188 = vector.shape_cast %187 : vector<16xf32> to vector<16x1xf32>
    %cst_87 = arith.constant 3.200000e+01 : f32
    %189 = vector.broadcast %cst_87 : f32 to vector<16x1xf32>
    %190 = arith.divf %188, %189 : vector<16x1xf32>
    %cst_88 = arith.constant 9.99999974E-6 : f32
    %191 = vector.broadcast %cst_88 : f32 to vector<16x1xf32>
    %192 = arith.addf %190, %191 : vector<16x1xf32>
    %193 = math.rsqrt %192 : vector<16x1xf32>
    %194 = vector.broadcast %193 : vector<16x1xf32> to vector<16x32xf32>
    %195 = arith.mulf %185, %194 : vector<16x32xf32>
    %196 = vector.broadcast %177 : vector<1x32xf32> to vector<16x32xf32>
    %197 = arith.mulf %195, %196 : vector<16x32xf32>
    %198 = vector.broadcast %179 : vector<1x32xf32> to vector<16x32xf32>
    %199 = arith.addf %197, %198 : vector<16x32xf32>
    %c0_89 = arith.constant 0 : index
    %c0_90 = arith.constant 0 : index
    %c0_91 = arith.constant 0 : index
    %200 = vector.load %arg15[%c0_89, %c0_90, %c0_91] : memref<1x32x128xf32, #tpu.memory_space<vmem>>, vector<1x32x128xf32>
    %201 = vector.shape_cast %200 : vector<1x32x128xf32> to vector<32x128xf32>
    %c0_92 = arith.constant 0 : index
    %c0_93 = arith.constant 0 : index
    %c0_94 = arith.constant 0 : index
    %202 = vector.load %arg16[%c0_92, %c0_93, %c0_94] : memref<1x1x128xf32, #tpu.memory_space<vmem>>, vector<1x1x128xf32>
    %203 = vector.shape_cast %202 : vector<1x1x128xf32> to vector<1x128xf32>
    %cst_95 = arith.constant dense<0.000000e+00> : vector<16x128xf32>
    %204 = tpu.matmul %199, %201, %cst_95 {dimension_numbers = #tpu.dot_dimension_numbers<[1], [0], [0], [1], [0, 0, 1, 1], [], []>} : vector<16x32xf32>, vector<32x128xf32>, vector<16x128xf32> -> vector<16x128xf32>
    %205 = vector.broadcast %203 : vector<1x128xf32> to vector<16x128xf32>
    %206 = arith.addf %204, %205 : vector<16x128xf32>
    %cst_96 = arith.constant 1.702000e+00 : f32
    %207 = vector.broadcast %cst_96 : f32 to vector<16x128xf32>
    %208 = arith.mulf %207, %206 : vector<16x128xf32>
    %209 = arith.negf %208 : vector<16x128xf32>
    %210 = math.exp %209 : vector<16x128xf32>
    %cst_97 = arith.constant 1.000000e+00 : f32
    %211 = vector.broadcast %cst_97 : f32 to vector<16x128xf32>
    %212 = arith.addf %211, %210 : vector<16x128xf32>
    %213 = arith.divf %211, %212 : vector<16x128xf32>
    %214 = arith.mulf %206, %213 : vector<16x128xf32>
    %c0_98 = arith.constant 0 : index
    %c0_99 = arith.constant 0 : index
    %c0_100 = arith.constant 0 : index
    %215 = vector.load %arg17[%c0_98, %c0_99, %c0_100] : memref<1x128x32xf32, #tpu.memory_space<vmem>>, vector<1x128x32xf32>
    %216 = vector.shape_cast %215 : vector<1x128x32xf32> to vector<128x32xf32>
    %c0_101 = arith.constant 0 : index
    %c0_102 = arith.constant 0 : index
    %c0_103 = arith.constant 0 : index
    %217 = vector.load %arg18[%c0_101, %c0_102, %c0_103] : memref<1x1x32xf32, #tpu.memory_space<vmem>>, vector<1x1x32xf32>
    %218 = vector.shape_cast %217 : vector<1x1x32xf32> to vector<1x32xf32>
    %cst_104 = arith.constant dense<0.000000e+00> : vector<16x32xf32>
    %219 = tpu.matmul %214, %216, %cst_104 {dimension_numbers = #tpu.dot_dimension_numbers<[1], [0], [0], [1], [0, 0, 1, 1], [], []>} : vector<16x128xf32>, vector<128x32xf32>, vector<16x32xf32> -> vector<16x32xf32>
    %220 = vector.broadcast %218 : vector<1x32xf32> to vector<16x32xf32>
    %221 = arith.addf %219, %220 : vector<16x32xf32>
    %222 = arith.addf %133, %221 : vector<16x32xf32>
    %223 = arith.addf %222, %175 : vector<16x32xf32>
    %224 = vector.shape_cast %223 : vector<16x32xf32> to vector<2x8x32xf32>
    %c0_105 = arith.constant 0 : index
    %c0_106 = arith.constant 0 : index
    %c0_107 = arith.constant 0 : index
    %225 = vector.load %arg29[%c0_105, %c0_106, %c0_107] : memref<2x8x32xf32, #tpu.memory_space<vmem>>, vector<2x8x32xf32>
    tpu.vector_store %arg29[%c0_105, %c0_106, %c0_107], %224 {strides = array<i32>} : memref<2x8x32xf32, #tpu.memory_space<vmem>>, vector<2x8x32xf32>,
    %c1_i32 = arith.constant 1 : i32
    %226 = arith.cmpi eq, %arg1, %c1_i32 : i32
    %227 = arith.extui %226 : i1 to i32
    %c0_i32_108 = arith.constant 0 : i32
    %228 = arith.cmpi ne, %227, %c0_i32_108 : i32
    scf.if %228 {
      %229 = vector.shape_cast %223 : vector<16x32xf32> to vector<2x8x32xf32>
      %230 = vector.extract_strided_slice %229 {offsets = [0, 0, 0], sizes = [2, 1, 32], strides = [1, 1, 1]} : vector<2x8x32xf32> to vector<2x1x32xf32>
      %231 = vector.shape_cast %230 : vector<2x1x32xf32> to vector<2x32xf32>
      %c0_109 = arith.constant 0 : index
      %c0_110 = arith.constant 0 : index
      %232 = vector.load %arg25[%c0_109, %c0_110] : memref<1x32xf32, #tpu.memory_space<vmem>>, vector<1x32xf32>
      %c0_111 = arith.constant 0 : index
      %c0_112 = arith.constant 0 : index
      %233 = vector.load %arg26[%c0_111, %c0_112] : memref<1x32xf32, #tpu.memory_space<vmem>>, vector<1x32xf32>
      %cst_113 = arith.constant dense<0.000000e+00> : vector<2xf32>
      %234 = vector.multi_reduction <add>, %231, %cst_113 [1] : vector<2x32xf32> to vector<2xf32>
      %235 = vector.shape_cast %234 : vector<2xf32> to vector<2x1xf32>
      %cst_114 = arith.constant 3.200000e+01 : f32
      %236 = vector.broadcast %cst_114 : f32 to vector<2x1xf32>
      %237 = arith.divf %235, %236 : vector<2x1xf32>
      %238 = vector.broadcast %237 : vector<2x1xf32> to vector<2x32xf32>
      %239 = arith.subf %231, %238 : vector<2x32xf32>
      %240 = arith.mulf %239, %239 : vector<2x32xf32>
      %cst_115 = arith.constant dense<0.000000e+00> : vector<2xf32>
      %241 = vector.multi_reduction <add>, %240, %cst_115 [1] : vector<2x32xf32> to vector<2xf32>
      %242 = vector.shape_cast %241 : vector<2xf32> to vector<2x1xf32>
      %cst_116 = arith.constant 3.200000e+01 : f32
      %243 = vector.broadcast %cst_116 : f32 to vector<2x1xf32>
      %244 = arith.divf %242, %243 : vector<2x1xf32>
      %cst_117 = arith.constant 9.99999974E-6 : f32
      %245 = vector.broadcast %cst_117 : f32 to vector<2x1xf32>
      %246 = arith.addf %244, %245 : vector<2x1xf32>
      %247 = math.rsqrt %246 : vector<2x1xf32>
      %248 = vector.broadcast %247 : vector<2x1xf32> to vector<2x32xf32>
      %249 = arith.mulf %239, %248 : vector<2x32xf32>
      %250 = vector.broadcast %232 : vector<1x32xf32> to vector<2x32xf32>
      %251 = arith.mulf %249, %250 : vector<2x32xf32>
      %252 = vector.broadcast %233 : vector<1x32xf32> to vector<2x32xf32>
      %253 = arith.addf %251, %252 : vector<2x32xf32>
      %c0_118 = arith.constant 0 : index
      %c0_119 = arith.constant 0 : index
      %254 = vector.load %arg27[%c0_118, %c0_119] : memref<32x16xf32, #tpu.memory_space<vmem>>, vector<32x16xf32>
      %cst_120 = arith.constant dense<0.000000e+00> : vector<2x16xf32>
      %255 = tpu.matmul %253, %254, %cst_120 {dimension_numbers = #tpu.dot_dimension_numbers<[1], [0], [0], [1], [0, 0, 1, 1], [], []>} : vector<2x32xf32>, vector<32x16xf32>, vector<2x16xf32> -> vector<2x16xf32>
      %c0_121 = arith.constant 0 : index
      %c0_122 = arith.constant 0 : index
      %256 = vector.load %arg28[%c0_121, %c0_122] : memref<2x16xf32, #tpu.memory_space<vmem>>, vector<2x16xf32>
      tpu.vector_store %arg28[%c0_121, %c0_122], %255 {strides = array<i32>} : memref<2x16xf32, #tpu.memory_space<vmem>>, vector<2x16xf32>,
    } else {
    }
    return
  }
  func.func @transform_0(%arg0: i32, %arg1: i32) -> (i32, i32, i32) {
    %c0_i32 = arith.constant 0 : i32
    %c0_i32_0 = arith.constant 0 : i32
    %c0_i32_1 = arith.constant 0 : i32
    return %arg0, %c0_i32, %c0_i32_0 : i32, i32, i32
  }
  func.func @transform_1(%arg0: i32, %arg1: i32) -> (i32, i32) {
    %c0_i32 = arith.constant 0 : i32
    %c0_i32_0 = arith.constant 0 : i32
    %c0_i32_1 = arith.constant 0 : i32
    return %c0_i32, %c0_i32_0 : i32, i32
  }
  func.func @transform_2(%arg0: i32, %arg1: i32) -> (i32, i32) {
    %c0_i32 = arith.constant 0 : i32
    %c0_i32_0 = arith.constant 0 : i32
    %c0_i32_1 = arith.constant 0 : i32
    return %c0_i32, %c0_i32_0 : i32, i32
  }
  func.func @transform_3(%arg0: i32, %arg1: i32) -> (i32, i32) {
    %c0_i32 = arith.constant 0 : i32
    %c0_i32_0 = arith.constant 0 : i32
    %c0_i32_1 = arith.constant 0 : i32
    return %c0_i32, %c0_i32_0 : i32, i32
  }
  func.func @transform_4(%arg0: i32, %arg1: i32) -> (i32, i32) {
    %c0_i32 = arith.constant 0 : i32
    %c0_i32_0 = arith.constant 0 : i32
    %c0_i32_1 = arith.constant 0 : i32
    return %c0_i32, %c0_i32_0 : i32, i32
  }
  func.func @transform_5(%arg0: i32, %arg1: i32) -> (i32, i32, i32) {
    %c0_i32 = arith.constant 0 : i32
    %c0_i32_0 = arith.constant 0 : i32
    %c0_i32_1 = arith.constant 0 : i32
    return %arg1, %c0_i32, %c0_i32_0 : i32, i32, i32
  }
  func.func @transform_6(%arg0: i32, %arg1: i32) -> (i32, i32, i32) {
    %c0_i32 = arith.constant 0 : i32
    %c0_i32_0 = arith.constant 0 : i32
    %c0_i32_1 = arith.constant 0 : i32
    return %arg1, %c0_i32, %c0_i32_0 : i32, i32, i32
  }
  func.func @transform_7(%arg0: i32, %arg1: i32) -> (i32, i32, i32) {
    %c0_i32 = arith.constant 0 : i32
    %c0_i32_0 = arith.constant 0 : i32
    %c0_i32_1 = arith.constant 0 : i32
    return %arg1, %c0_i32, %c0_i32_0 : i32, i32, i32
  }
  func.func @transform_8(%arg0: i32, %arg1: i32) -> (i32, i32, i32) {
    %c0_i32 = arith.constant 0 : i32
    %c0_i32_0 = arith.constant 0 : i32
    %c0_i32_1 = arith.constant 0 : i32
    return %arg1, %c0_i32, %c0_i32_0 : i32, i32, i32
  }
  func.func @transform_9(%arg0: i32, %arg1: i32) -> (i32, i32, i32) {
    %c0_i32 = arith.constant 0 : i32
    %c0_i32_0 = arith.constant 0 : i32
    %c0_i32_1 = arith.constant 0 : i32
    return %arg1, %c0_i32, %c0_i32_0 : i32, i32, i32
  }
  func.func @transform_10(%arg0: i32, %arg1: i32) -> (i32, i32, i32) {
    %c0_i32 = arith.constant 0 : i32
    %c0_i32_0 = arith.constant 0 : i32
    %c0_i32_1 = arith.constant 0 : i32
    return %arg1, %c0_i32, %c0_i32_0 : i32, i32, i32
  }
  func.func @transform_11(%arg0: i32, %arg1: i32) -> (i32, i32, i32) {
    %c0_i32 = arith.constant 0 : i32
    %c0_i32_0 = arith.constant 0 : i32
    %c0_i32_1 = arith.constant 0 : i32
    return %arg1, %c0_i32, %c0_i32_0 : i32, i32, i32
  }
  func.func @transform_12(%arg0: i32, %arg1: i32) -> (i32, i32, i32) {
    %c0_i32 = arith.constant 0 : i32
    %c0_i32_0 = arith.constant 0 : i32
    %c0_i32_1 = arith.constant 0 : i32
    return %arg1, %c0_i32, %c0_i32_0 : i32, i32, i32
  }
  func.func @transform_13(%arg0: i32, %arg1: i32) -> (i32, i32, i32) {
    %c0_i32 = arith.constant 0 : i32
    %c0_i32_0 = arith.constant 0 : i32
    %c0_i32_1 = arith.constant 0 : i32
    return %arg1, %c0_i32, %c0_i32_0 : i32, i32, i32
  }
  func.func @transform_14(%arg0: i32, %arg1: i32) -> (i32, i32, i32) {
    %c0_i32 = arith.constant 0 : i32
    %c0_i32_0 = arith.constant 0 : i32
    %c0_i32_1 = arith.constant 0 : i32
    return %arg1, %c0_i32, %c0_i32_0 : i32, i32, i32
  }
  func.func @transform_15(%arg0: i32, %arg1: i32) -> (i32, i32, i32) {
    %c0_i32 = arith.constant 0 : i32
    %c0_i32_0 = arith.constant 0 : i32
    %c0_i32_1 = arith.constant 0 : i32
    return %arg1, %c0_i32, %c0_i32_0 : i32, i32, i32
  }
  func.func @transform_16(%arg0: i32, %arg1: i32) -> (i32, i32, i32) {
    %c0_i32 = arith.constant 0 : i32
    %c0_i32_0 = arith.constant 0 : i32
    %c0_i32_1 = arith.constant 0 : i32
    return %arg1, %c0_i32, %c0_i32_0 : i32, i32, i32
  }
  func.func @transform_17(%arg0: i32, %arg1: i32) -> (i32, i32, i32) {
    %c0_i32 = arith.constant 0 : i32
    %c0_i32_0 = arith.constant 0 : i32
    %c0_i32_1 = arith.constant 0 : i32
    return %arg1, %c0_i32, %c0_i32_0 : i32, i32, i32
  }
  func.func @transform_18(%arg0: i32, %arg1: i32) -> (i32, i32, i32) {
    %c0_i32 = arith.constant 0 : i32
    %c0_i32_0 = arith.constant 0 : i32
    %c0_i32_1 = arith.constant 0 : i32
    return %arg1, %c0_i32, %c0_i32_0 : i32, i32, i32
  }
  func.func @transform_19(%arg0: i32, %arg1: i32) -> (i32, i32, i32) {
    %c0_i32 = arith.constant 0 : i32
    %c0_i32_0 = arith.constant 0 : i32
    %c0_i32_1 = arith.constant 0 : i32
    return %arg1, %c0_i32, %c0_i32_0 : i32, i32, i32
  }
  func.func @transform_20(%arg0: i32, %arg1: i32) -> (i32, i32, i32) {
    %c0_i32 = arith.constant 0 : i32
    %c0_i32_0 = arith.constant 0 : i32
    %c0_i32_1 = arith.constant 0 : i32
    return %arg1, %c0_i32, %c0_i32_0 : i32, i32, i32
  }
  func.func @transform_21(%arg0: i32, %arg1: i32) -> (i32, i32, i32) {
    %c0_i32 = arith.constant 0 : i32
    %c0_i32_0 = arith.constant 0 : i32
    %c0_i32_1 = arith.constant 0 : i32
    return %arg1, %c0_i32, %c0_i32_0 : i32, i32, i32
  }
  func.func @transform_22(%arg0: i32, %arg1: i32) -> (i32, i32, i32) {
    %c0_i32 = arith.constant 0 : i32
    %c0_i32_0 = arith.constant 0 : i32
    %c0_i32_1 = arith.constant 0 : i32
    return %arg1, %c0_i32, %c0_i32_0 : i32, i32, i32
  }
  func.func @transform_23(%arg0: i32, %arg1: i32) -> (i32, i32) {
    %c0_i32 = arith.constant 0 : i32
    %c0_i32_0 = arith.constant 0 : i32
    %c0_i32_1 = arith.constant 0 : i32
    return %c0_i32, %c0_i32_0 : i32, i32
  }
  func.func @transform_24(%arg0: i32, %arg1: i32) -> (i32, i32) {
    %c0_i32 = arith.constant 0 : i32
    %c0_i32_0 = arith.constant 0 : i32
    %c0_i32_1 = arith.constant 0 : i32
    return %c0_i32, %c0_i32_0 : i32, i32
  }
  func.func @transform_25(%arg0: i32, %arg1: i32) -> (i32, i32) {
    %c0_i32 = arith.constant 0 : i32
    %c0_i32_0 = arith.constant 0 : i32
    %c0_i32_1 = arith.constant 0 : i32
    return %c0_i32, %c0_i32_0 : i32, i32
  }
  func.func @transform_26(%arg0: i32, %arg1: i32) -> (i32, i32) {
    %c0_i32 = arith.constant 0 : i32
    %c0_i32_0 = arith.constant 0 : i32
    return %arg0, %c0_i32 : i32, i32
  }
}

</mosaic_0001>

<bundles_post_ra>
// kernel: tpu_custom_call.1
= control target key start
LH: loop header
LB: loop body
LE: loop exit
PB: predicated region body
PF: predicated region fallthrough
CT: control target
= control target key end

     0   :  { %s5019_s0 = inlined_call_operand.vmem [shape: f32[2,8,192], index: 0, kind: input, shape index: {}]   ;;  %s5020_s1 = inlined_call_operand.vmem [shape: f32[192,32], index: 1, kind: input, shape index: {}]   ;;  %s5021_s2 = inlined_call_operand.vmem [shape: f32[8,32], index: 2, kind: input, shape index: {}]   ;;  %s5022_s3 = inlined_call_operand.vmem [shape: f32[1,32], index: 3, kind: input, shape index: {}]   ;;  %s5023_s4 = inlined_call_operand.vmem [shape: f32[1,32], index: 4, kind: input, shape index: {}]   ;;  %s5024_s5 = inlined_call_operand.vmem [shape: f32[2,1,32], index: 5, kind: input, shape index: {}]   ;;  %s5025_s6 = inlined_call_operand.vmem [shape: f32[2,1,32], index: 6, kind: input, shape index: {}]   ;;  %s5026_s7 = inlined_call_operand.vmem [shape: f32[2,32,96], index: 7, kind: input, shape index: {}]   ;;  %s5027_s8 = inlined_call_operand.vmem [shape: f32[2,1,96], index: 8, kind: input, shape index: {}]   ;;  %s5028_s9 = inlined_call_operand.vmem [shape: f32[2,32,32], index: 9, kind: input, shape index: {}]   ;;  %s5029_s10 = inlined_call_operand.vmem [shape: f32[2,1,32], index: 10, kind: input, shape index: {}]   ;;  %s5030_s11 = inlined_call_operand.vmem [shape: f32[2,1,32], index: 11, kind: input, shape index: {}]   ;;  %s5031_s12 = inlined_call_operand.vmem [shape: f32[2,1,32], index: 12, kind: input, shape index: {}]   ;;  %s5032_s13 = inlined_call_operand.vmem [shape: f32[2,32,128], index: 13, kind: input, shape index: {}]   ;;  %s5033_s14 = inlined_call_operand.vmem [shape: f32[2,1,128], index: 14, kind: input, shape index: {}]   ;;  %s5034_s15 = inlined_call_operand.vmem [shape: f32[2,128,32], index: 15, kind: input, shape index: {}]   ;;  %s5035_s16 = inlined_call_operand.vmem [shape: f32[2,1,32], index: 16, kind: input, shape index: {}]   ;;  %s5036_s17 = inlined_call_operand.vmem [shape: f32[2,1,32], index: 17, kind: input, shape index: {}]   ;;  %s5037_s18 = inlined_call_operand.vmem [shape: f32[2,1,32], index: 18, kind: input, shape index: {}]   ;;  %s5038_s19 = inlined_call_operand.vmem [shape: f32[2,32,64], index: 19, kind: input, shape index: {}]   ;;  %s5039_s20 = inlined_call_operand.vmem [shape: f32[2,1,64], index: 20, kind: input, shape index: {}]   ;;  %s5040_s21 = inlined_call_operand.vmem [shape: f32[2,64,32], index: 21, kind: input, shape index: {}]   ;;  %s5041_s22 = inlined_call_operand.vmem [shape: f32[2,1,32], index: 22, kind: input, shape index: {}]   ;;  %s5042_s23 = inlined_call_operand.vmem [shape: f32[1,32], index: 23, kind: input, shape index: {}]   ;;  %s5043_s24 = inlined_call_operand.vmem [shape: f32[1,32], index: 24, kind: input, shape index: {}]   ;;  %s5044_s25 = inlined_call_operand.vmem [shape: f32[32,16], index: 25, kind: input, shape index: {}]   ;;  %s5045_s26 = inlined_call_operand.hbm [shape: f32[2,16], index: 26, kind: output, shape index: {}]  }
   0x1   :  { %5053 = sst [smem:[#allocation11_spill]] %s5019_s0 }
   0x2   :  { %5054 = sst [smem:[#allocation12_spill]] %s5020_s1 }
   0x3   :  { %5055 = sst [smem:[#allocation13_spill]] %s5021_s2 }
   0x4   :  { %5056 = sst [smem:[#allocation14_spill]] %s5022_s3 }
   0x5   :  { %5057 = sst [smem:[#allocation15_spill]] %s5023_s4 }
   0x6   :  { %5058 = sst [smem:[#allocation16_spill]] %s5024_s5 }
   0x7   :  { %5059 = sst [smem:[#allocation17_spill]] %s5025_s6 }
   0x8   :  { %5060 = sst [smem:[#allocation18_spill]] %s5026_s7 }
   0x9   :  { %5061 = sst [smem:[#allocation19_spill]] %s5027_s8 }
   0xa   :  { %5062 = sst [smem:[#allocation20_spill]] %s5028_s9 }
   0xb   :  { %5063 = sst [smem:[#allocation21_spill]] %s5029_s10 }
   0xc   :  { %5064 = sst [smem:[#allocation22_spill]] %s5032_s13 }
   0xd   :  { %5065 = sst [smem:[#allocation23_spill]] %s5034_s15 }
   0xe   :  { %5066 = sst [smem:[#allocation24_spill]] %s5040_s21 }
   0xf   :  { %5067 = sst [smem:[#allocation25_spill]] %s5042_s23 }
  0x10   :  { %5068 = sst [smem:[#allocation26_spill]] %s5043_s24 }
  0x11   :  { %5069 = sst [smem:[#allocation27_spill]] %s5044_s25 }
  0x12   :  { %5070 = sst [smem:[#allocation28_spill]] %s5045_s26 }
  0x13   :  { %31 = vsyncpa [#allocation4], 0  ;;  %s4429_s27 = smov 0   ;;  %s4431_s3 = smov 0  }
  0x14   :  { %s4433_s7 = smov 0  }
  0x15 LB: > { %5071 = sst [smem:[#allocation6_spill]] %s4264_s27  ;;  %s46_s8 = sadd.s32 1, %s4268_s3  ;;  %s4272_s7 = sphi %s4433_s7, %s37_s7   ;;  %s4268_s3 = sphi %s4431_s3, %s5117_s3   ;;  %s4264_s27 = sphi %s4429_s27, %s5116_s27  }
  0x16   : > { %5072 = sst [smem:[#allocation7_spill]] %s4268_s3  ;;  %p47_p0 = scmp.ge.s32.totalorder %s46_s8, 2 }
  0x17   : > { %5073 = sst [smem:[#allocation8_spill]] %s4272_s7  ;;  %p3712_p1 = scmp.ge.s32.totalorder %s4272_s7, 1 }
  0x18   : > { %p883_p2 = scmp.lt.s32.totalorder %s4272_s7, 3  ;;  %s5119_s8 = smov (%p47_p0, %s46_s8), 0 }
  0x19   : > { %5074 = sst [smem:[#allocation9_spill]] %s5119_s8 }
  0x1a   : > { %p884_p3 = pnand %p3712_p1, %p883_p2 }
  0x1c   : > { %887 = sbr.rel (%p884_p3) target bundleno = 5088 (0x13e0), region = 124 }
  0x21   : > { %p1022_p4 = scmp.lt.s32.totalorder %s4264_s27, 1  ;;  %s5078_s7 = sld [smem:[#allocation18_spill]] }
  0x22   : > { %s5079_s9 = sld [smem:[#allocation20_spill]] }
  0x23   : > { %s4452_s4 = scalar_select %p1022_p4, %s4264_s27, 1 }
  0x24   : > { %s5082_s13 = sld [smem:[#allocation22_spill]] }
  0x25   : > { %s3786_s1 = sshll.u32 %s4452_s4, 5  ;;  %s5083_s15 = sld [smem:[#allocation23_spill]] }
  0x26   : > { %s1071_s6 = scalar_lea.vmem %s5037_s18, %s4452_s4  ;;  %s1079_s5 = scalar_lea.vmem %s5039_s20, %s4452_s4 }
  0x27   : > { %s4470_s24 = scalar_lea.vmem %s5078_s7, %s3786_s1  ;;  %s1087_s29 = scalar_lea.vmem %s5041_s22, %s4452_s4 }
  0x28   : > { %s4475_s30 = scalar_lea.vmem %s5079_s9, %s3786_s1  ;;  %s4519_s9 = scalar_lea.vmem %s5038_s19, %s3786_s1 }
  0x29   : > { %5080 = sst [smem:[#allocation10_spill]] %s4475_s30  ;;  %s3789_s30 = sshll.u32 %s4452_s4, 7 }
  0x2a   : > { %s4492_s8 = scalar_lea.vmem %s5082_s13, %s3786_s1  ;;  %s3791_s13 = sshll.u32 %s4452_s4, 6 }
  0x2b   : > { %s4502_s10 = scalar_lea.vmem %s5083_s15, %s3789_s30  ;;  %s5084_s3 = sld [smem:[#allocation24_spill]] }
  0x2c   : > { %s5085_s28 = sld [smem:[#allocation6_spill]] }
  0x31   : > { %s4533_s15 = scalar_lea.vmem %s5084_s3, %s3791_s13 }
  0x32   : > { %p3725_p5 = scmp.ne.s32.totalorder %s5085_s28, 0 }
  0x33   : > { %s5086_s23 = sld [smem:[#allocation12_spill]] (!%p3725_p5) }
  0x34   : > { %1091 = sbr.rel (%p3725_p5) target bundleno = 614 (0x266), region = 128  ;;  %s5087_s7 = sld [smem:[#allocation11_spill]] (!%p3725_p5) }
  0x35   : > { %s5090_s13 = sld [smem:[#allocation14_spill]] (!%p3725_p5) }
  0x36   : > { %s5091_s21 = sld [smem:[#allocation15_spill]] (!%p3725_p5) }
  0x39   : > { %v1111_v0 = vld [vmem:[%s5086_s23 + $0x78] sm:$0xff]  ;;  %v4274_v1 = vmov 0.0   ;;  %v1110_v2 = vld [vmem:[%s5086_s23 + $0x70] sm:$0xff]  ;;  %v1109_v3 = vld [vmem:[%s5086_s23 + $0x68] sm:$0xff]  ;;  %vm1120_vm0 = vcmask 523264   ;;  %vm1207_vm1 = vcmask 261120  }
  0x3a   : > { %1127 = vmatprep.subr.mxu0 %v4274_v1  ;;  %4070 = vmatprep.subr.mxu1 %v4274_v1  ;;  %v1108_v4 = vld [vmem:[%s5086_s23 + $0x60] sm:$0xff]  ;;  %v1107_v5 = vld [vmem:[%s5086_s23 + $0x58] sm:$0xff]  ;;  %v1106_v6 = vld [vmem:[%s5086_s23 + $0x50] sm:$0xff]  ;;  %s5088_s1 = smov %s5087_s7 }
  0x3b   : > { %1128 = vmatpush1.msra.mxu0 %v1111_v0  ;;  %4094 = vmatpush1.msra.mxu1 %v1111_v0  ;;  %v1105_v7 = vld [vmem:[%s5086_s23 + $0x48] sm:$0xff]  ;;  %v1104_v8 = vld [vmem:[%s5086_s23 + $0x40] sm:$0xff]  ;;  %v1103_v9 = vld [vmem:[%s5086_s23 + $0x38] sm:$0xff] }
  0x3c   : > { %1129 = vmatprep.subr.mxu0 %v4274_v1  ;;  %4071 = vmatprep.subr.mxu1 %v4274_v1  ;;  %v1102_v10 = vld [vmem:[%s5086_s23 + $0x30] sm:$0xff]  ;;  %v1101_v11 = vld [vmem:[%s5086_s23 + $0x28] sm:$0xff]  ;;  %v1100_v12 = vld [vmem:[%s5086_s23 + $0x20] sm:$0xff] }
  0x3d   : > { %1130 = vmatpush1.msra.mxu0 %v1110_v2  ;;  %4095 = vmatpush1.msra.mxu1 %v1110_v2  ;;  %v1099_v13 = vld [vmem:[%s5086_s23 + $0x18] sm:$0xff]  ;;  %v1098_v14 = vld [vmem:[%s5086_s23 + $0x10] sm:$0xff]  ;;  %v1097_v15 = vld [vmem:[%s5086_s23 + $0x8] sm:$0xff] }
  0x3e   : > { %1131 = vmatprep.subr.mxu0 %v4274_v1  ;;  %4072 = vmatprep.subr.mxu1 %v4274_v1  ;;  %v1096_v16 = vld [vmem:[%s5086_s23] sm:$0xff]  ;;  %v1119_v17 = vld [vmem:[%s5086_s23 + $0xb8] sm:$0xff]  ;;  %v1118_v18 = vld [vmem:[%s5086_s23 + $0xb0] sm:$0xff] }
  0x3f   : > { %1132 = vmatpush1.msra.mxu0 %v1109_v3  ;;  %4096 = vmatpush1.msra.mxu1 %v1109_v3  ;;  %v1117_v19 = vld [vmem:[%s5086_s23 + $0xa8] sm:$0xff]  ;;  %v1116_v20 = vld [vmem:[%s5086_s23 + $0xa0] sm:$0xff]  ;;  %v1115_v21 = vld [vmem:[%s5086_s23 + $0x98] sm:$0xff] }
  0x40   : > { %1133 = vmatprep.subr.mxu0 %v4274_v1  ;;  %4073 = vmatprep.subr.mxu1 %v4274_v1  ;;  %v1114_v22 = vld [vmem:[%s5086_s23 + $0x90] sm:$0xff]  ;;  %v1113_v23 = vld [vmem:[%s5086_s23 + $0x88] sm:$0xff]  ;;  %v1112_v25 = vld [vmem:[%s5086_s23 + $0x80] sm:$0xff] }
  0x41   : > { %1134 = vmatpush1.msra.mxu0 %v1108_v4  ;;  %4097 = vmatpush1.msra.mxu1 %v1108_v4  ;;  %v1093_v24 = vld [vmem:[%s5087_s7 + $0x8] sm:$0xff]  ;;  %v1092_v26 = vld [vmem:[%s5088_s1] sm:$0xff]  ;;  %v1095_v27 = vld [vmem:[%s5088_s1 + $0x18] sm:$0xff]  ;;  %s5089_s7 = sld [smem:[#allocation13_spill]] }
  0x42   : > { %1135 = vmatprep.subr.mxu0 %v4274_v1  ;;  %4074 = vmatprep.subr.mxu1 %v4274_v1  ;;  %v1094_v28 = vld [vmem:[%s5088_s1 + $0x10] sm:$0xff]  ;;  %v3728_v55 = vld [vmem:[%s5090_s13] ss:$0 sm:$0xff] }
  0x43   : > { %1136 = vmatpush1.msra.mxu0 %v1107_v5  ;;  %4098 = vmatpush1.msra.mxu1 %v1107_v5  ;;  %v3729_v57 = vld [vmem:[%s5091_s21] ss:$0 sm:$0xff] }
  0x44   : > { %1137 = vmatprep.subr.mxu0 %v4274_v1  ;;  %4075 = vmatprep.subr.mxu1 %v4274_v1 }
  0x45   : > { %1138 = vmatpush1.msra.mxu0 %v1106_v6  ;;  %4099 = vmatpush1.msra.mxu1 %v1106_v6 }
  0x46   : > { %1139 = vmatprep.subr.mxu0 %v4274_v1  ;;  %4076 = vmatprep.subr.mxu1 %v4274_v1 }
  0x47   : > { %1140 = vmatpush1.msra.mxu0 %v1105_v7  ;;  %4100 = vmatpush1.msra.mxu1 %v1105_v7  ;;  %v1202_v29 = vld [vmem:[%s5089_s7] sm:$0xff] }
  0x48   : > { %1141 = vmatprep.subr.mxu0 %v4274_v1  ;;  %4077 = vmatprep.subr.mxu1 %v4274_v1 }
  0x49   : > { %1142 = vmatpush1.msra.mxu0 %v1104_v8  ;;  %4101 = vmatpush1.msra.mxu1 %v1104_v8 }
  0x4a   : > { %1143 = vmatprep.subr.mxu0 %v4274_v1  ;;  %4078 = vmatprep.subr.mxu1 %v4274_v1 }
  0x4b   : > { %1144 = vmatpush1.msra.mxu0 %v1103_v9  ;;  %4102 = vmatpush1.msra.mxu1 %v1103_v9 }
  0x4c   : > { %1145 = vmatprep.subr.mxu0 %v4274_v1  ;;  %4079 = vmatprep.subr.mxu1 %v4274_v1 }
  0x4d   : > { %1146 = vmatpush1.msra.mxu0 %v1102_v10  ;;  %4103 = vmatpush1.msra.mxu1 %v1102_v10 }
  0x4e   : > { %1147 = vmatprep.subr.mxu0 %v4274_v1  ;;  %4080 = vmatprep.subr.mxu1 %v4274_v1 }
  0x4f   : > { %1148 = vmatpush1.msra.mxu0 %v1101_v11  ;;  %4104 = vmatpush1.msra.mxu1 %v1101_v11 }
  0x50   : > { %1149 = vmatprep.subr.mxu0 %v4274_v1  ;;  %4081 = vmatprep.subr.mxu1 %v4274_v1 }
  0x51   : > { %1150 = vmatpush1.msra.mxu0 %v1100_v12  ;;  %4105 = vmatpush1.msra.mxu1 %v1100_v12 }
  0x52   : > { %1151 = vmatprep.subr.mxu0 %v4274_v1  ;;  %4082 = vmatprep.subr.mxu1 %v4274_v1 }
  0x53   : > { %1152 = vmatpush1.msra.mxu0 %v1099_v13  ;;  %4106 = vmatpush1.msra.mxu1 %v1099_v13 }
  0x54   : > { %1153 = vmatprep.subr.mxu0 %v4274_v1  ;;  %4083 = vmatprep.subr.mxu1 %v4274_v1 }
  0x55   : > { %1154 = vmatpush1.msra.mxu0 %v1098_v14  ;;  %4107 = vmatpush1.msra.mxu1 %v1098_v14 }
  0x56   : > { %1155 = vmatprep.subr.mxu0 %v4274_v1  ;;  %4084 = vmatprep.subr.mxu1 %v4274_v1 }
  0x57   : > { %1156 = vmatpush1.msra.mxu0 %v1097_v15  ;;  %4108 = vmatpush1.msra.mxu1 %v1097_v15 }
  0x58   : > { %1157 = vmatprep.subr.mxu0 %v4274_v1  ;;  %4085 = vmatprep.subr.mxu1 %v4274_v1 }
  0x59   : > { %1158 = vmatpush1.msra.mxu0 %v1096_v16  ;;  %4109 = vmatpush1.msra.mxu1 %v1096_v16 }
  0x5a   : > { %1175 = vmatprep.subr.mxu0 %v4274_v1  ;;  %4086 = vmatprep.subr.mxu1 %v4274_v1 }
  0x5b   : > { %1176 = vmatpush2.msra.mxu0 %v1119_v17  ;;  %4110 = vmatpush2.msra.mxu1 %v1119_v17 }
  0x5c   : > { %1177 = vmatprep.subr.mxu0 %v4274_v1  ;;  %4087 = vmatprep.subr.mxu1 %v4274_v1 }
  0x5d   : > { %1178 = vmatpush2.msra.mxu0 %v1118_v18  ;;  %4111 = vmatpush2.msra.mxu1 %v1118_v18 }
  0x5e   : > { %1179 = vmatprep.subr.mxu0 %v4274_v1  ;;  %4088 = vmatprep.subr.mxu1 %v4274_v1 }
  0x5f   : > { %1180 = vmatpush2.msra.mxu0 %v1117_v19  ;;  %4112 = vmatpush2.msra.mxu1 %v1117_v19 }
  0x60   : > { %1181 = vmatprep.subr.mxu0 %v4274_v1  ;;  %4089 = vmatprep.subr.mxu1 %v4274_v1 }
  0x61   : > { %1182 = vmatpush2.msra.mxu0 %v1116_v20  ;;  %4113 = vmatpush2.msra.mxu1 %v1116_v20 }
  0x62   : > { %1183 = vmatprep.subr.mxu0 %v4274_v1  ;;  %4090 = vmatprep.subr.mxu1 %v4274_v1 }
  0x63   : > { %1184 = vmatpush2.msra.mxu0 %v1115_v21  ;;  %4114 = vmatpush2.msra.mxu1 %v1115_v21 }
  0x64   : > { %1185 = vmatprep.subr.mxu0 %v4274_v1  ;;  %4091 = vmatprep.subr.mxu1 %v4274_v1 }
  0x65   : > { %1186 = vmatpush2.msra.mxu0 %v1114_v22  ;;  %4115 = vmatpush2.msra.mxu1 %v1114_v22 }
  0x66   : > { %1187 = vmatprep.subr.mxu0 %v4274_v1  ;;  %4092 = vmatprep.subr.mxu1 %v4274_v1 }
  0x67   : > { %1188 = vmatpush2.msra.mxu0 %v1113_v23  ;;  %4116 = vmatpush2.msra.mxu1 %v1113_v23 }
  0x68   : > { %1189 = vmatprep.subr.mxu0 %v4274_v1  ;;  %3726 = vmatprep.mubr.msk.f32.mxu0 %vm1120_vm0, %v1093_v24 }
  0x69   : > { %1190 = vmatpush2.msra.mxu0 %v1112_v25  ;;  %4093 = vmatprep.subr.mxu1 %v4274_v1 }
  0x6a   : > { %1192 = vmatmul.mubr.f32.vlgmr.msra.gmra.mxu0 %v1092_v26  ;;  %4117 = vmatpush2.msra.mxu1 %v1112_v25 }
  0x6b   : > { %3727 = vmatprep.mubr.msk.f32.mxu1 %vm1120_vm0, %v1095_v27 }
  0x6c   : > { %1197 = vmatmul.mubr.f32.vlgmr.msra.gmra.mxu1 %v1094_v28 }
 0x12a   : > { %v1193_v30 = vpop.f32.mrf.mxu0 }
 0x12b   : > { %v1203_v31 = vadd.f32 %v1202_v29, %v1193_v30 }
 0x12c   : > { %v1195_v32 = vpop.f32.mrf.mxu0  ;;  %v1198_v33 = vpop.f32.mrf.mxu1 }
 0x12d   : > { %v1204_v34 = vadd.f32 %v1202_v29, %v1198_v33  ;;  %v1208_v35 = vsel %vm1207_vm1, %v1203_v31, 0.0 }
 0x12e   : > { %v1200_v36 = vpop.f32.mrf.mxu1  ;;  %1209 = vadd.xlane.f32.xlu0 %v1208_v35 }
 0x12f   : > { %v1211_v37 = vsel %vm1207_vm1, %v1204_v34, 0.0 }
 0x132   : > { %1212 = vadd.xlane.f32.xlu0 %v1211_v37 }
 0x1b7   : > { %v1210_v38 = vpop.xlane.xlu0 %1209 }
 0x1b8   : > { %v1215_v39 = vmul.f32 0.03125, %v1210_v38 }
 0x1ba   : > { %v1217_v40 = vsub.f32 %v1203_v31, %v1215_v39 }
 0x1bb   : > { %v1213_v41 = vpop.xlane.xlu0 %1212 }
 0x1bc   : > { %v1216_v42 = vmul.f32 0.03125, %v1213_v41  ;;  %v1219_v43 = vmul.f32 %v1217_v40, %v1217_v40 }
 0x1be   : > { %v1218_v44 = vsub.f32 %v1204_v34, %v1216_v42  ;;  %v1221_v45 = vsel %vm1207_vm1, %v1219_v43, 0.0 }
 0x1bf   : > { %1222 = vadd.xlane.f32.xlu1 %v1221_v45 }
 0x1c0   : > { %v1220_v46 = vmul.f32 %v1218_v44, %v1218_v44 }
 0x1c2   : > { %v1224_v47 = vsel %vm1207_vm1, %v1220_v46, 0.0 }
 0x1c3   : > { %1225 = vadd.xlane.f32.xlu1 %v1224_v47 }
 0x248   : > { %v1223_v48 = vpop.xlane.xlu1 %1222 }
 0x249   : > { %v1227_v49 = vmul.f32 0.03125, %v1223_v48 }
 0x24b   : > { %v1229_v50 = vadd.f32 1e-05, %v1227_v49 }
 0x24c   : > { %v1226_v51 = vpop.xlane.xlu1 %1225 }
 0x24d   : > { %4168 = vrsqrt.f32 %v1229_v50  ;;  %v1228_v52 = vmul.f32 0.03125, %v1226_v51 }
 0x24f   : > { %v1230_v53 = vadd.f32 1e-05, %v1228_v52 }
 0x251   : > { %4170 = vrsqrt.f32 %v1230_v53 }
 0x25a   : > { %v4169_v54 = vpop.eup %4168 }
 0x25b   : > { %v1233_v56 = vmul.f32 %v4169_v54, %v1217_v40 }
 0x25d   : > { %v1241_v58 = vmul.f32 %v3728_v55, %v1233_v56 }
 0x25e   : > { %v4171_v59 = vpop.eup %4170 }
 0x25f   : > { %v1249_v60 = vadd.f32 %v3729_v57, %v1241_v58  ;;  %v1234_v61 = vmul.f32 %v4171_v59, %v1218_v44 }
 0x261   : > { %1251 = vst.msk [vmem:[#allocation2] sm:$0xff] %vm1207_vm1, %v1249_v60  ;;  %v1242_v62 = vmul.f32 %v3728_v55, %v1234_v61 }
 0x263   : > { %v1250_v63 = vadd.f32 %v3729_v57, %v1242_v62 }
 0x265   : > { %1252 = vst.msk [vmem:[#allocation2 + $0x8] sm:$0xff] %vm1207_vm1, %v1250_v63 }
 0x266 PF: > { %vm1257_vm2 = vcmask 261120   ;;  %v1304_v14 = vld [vmem:[%s4470_s24 + $0x18] sm:$0xff]  ;;  %v1303_v15 = vld [vmem:[%s4470_s24 + $0x10] sm:$0xff]  ;;  %v1302_v16 = vld [vmem:[%s4470_s24 + $0x8] sm:$0xff]  ;;  %s5092_s0 = sld [smem:[#allocation16_spill]]  ;;  %v4275_v34 = vmov 0.0   ;;  %v1393_v42 = vlaneseq }
 0x267   : > { %3881 = vmatprep.subr.mxu0 %v1304_v14  ;;  %v1301_v17 = vld [vmem:[%s4470_s24] sm:$0xff]  ;;  %s5094_s24 = sld [smem:[#allocation17_spill]]  ;;  %3897 = vmatprep.subr.mxu1 %v4275_v34  ;;  %vm4276_vm3 = vmmov 0   ;;  %s4277_s27 = smov 96   ;;  %vm1399_vm4 = vcmask 64512   ;;  %vm2759_vm6 = vcmask 130048  }
 0x268   : > { %v4683_v0 = vld [vmem:[#allocation2] sm:$0xff]  ;;  %3882 = vmatpush3.msra.mxu0 %v1304_v14  ;;  %3899 = vmatprep.mubr.msk.f32.mxu1 %vm4276_vm3, %v4275_v34  ;;  %s5096_s30 = sld [smem:[#allocation19_spill]]  ;;  %v4740_v43 = vand.u32 127, %v1393_v42  ;;  %s4278_s26 = smov 64   ;;  %vm2762_vm7 = vcmask 195584   ;;  %vm3012_vm8 = vcmask 523264  }
 0x269   : > { %v1258_v2 = vsel %vm1257_vm2, %v4683_v0, 0.0  ;;  %3883 = vmatprep.subr.mxu0 %v1303_v15  ;;  %s4281_s7 = smov 56   ;;  %s4282_s25 = smov 80  }
 0x26a   : > { %1259 = vadd.xlane.f32.xlu0 %v1258_v2  ;;  %3884 = vmatpush3.msra.mxu0 %v1303_v15  ;;  %vm1395_vm5 = vcmp.lt.s32.totalorder %v4740_v43, 5  ;;  %s4285_s13 = smov 72   ;;  %s4286_s3 = smov 104  }
 0x26b   : > { %3885 = vmatprep.subr.mxu0 %v1302_v16 }
 0x26c   : > { %v4685_v1 = vld [vmem:[#allocation2 + $0x8] sm:$0xff]  ;;  %3886 = vmatpush3.msra.mxu0 %v1302_v16  ;;  %s5093_s28 = scalar_lea.vmem %s5092_s0, %s4452_s4  ;;  %s4279_s0 = smov 88  }
 0x26d   : > { %v1261_v3 = vsel %vm1257_vm2, %v4685_v1, 0.0  ;;  %3887 = vmatprep.subr.mxu0 %v1301_v17  ;;  %v3730_v25 = vld [vmem:[%s5093_s28] ss:$0 sm:$0xff]  ;;  %s5095_s2 = scalar_lea.vmem %s5094_s24, %s4452_s4  ;;  %s4280_s28 = smov 120  }
 0x26e   : > { %1262 = vadd.xlane.f32.xlu0 %v1261_v3  ;;  %3888 = vmatpush3.msra.mxu0 %v1301_v17  ;;  %v3731_v27 = vld [vmem:[%s5095_s2] ss:$0 sm:$0xff]  ;;  %s5097_s21 = scalar_lea.vmem %s5096_s30, %s4452_s4  ;;  %s4283_s24 = smov 112  }
 0x26f   : > { %3892 = vmatprep.subr.mxu0 %v4275_v34  ;;  %v3732_v35 = vld [vmem:[%s5097_s21] ss:$0 sm:$0xff]  ;;  %s4284_s2 = smov 48   ;;  %s4287_s30 = smov 40  }
 0x270   : > { %s4288_s21 = smov 8  }
 0x2f3   : > { %v1260_v4 = vpop.xlane.xlu0 %1259 }
 0x2f4   : > { %v1265_v5 = vmul.f32 0.03125, %v1260_v4 }
 0x2f6   : > { %v1267_v6 = vsub.f32 %v4683_v0, %v1265_v5 }
 0x2f7   : > { %v1263_v7 = vpop.xlane.xlu0 %1262 }
 0x2f8   : > { %v1266_v8 = vmul.f32 0.03125, %v1263_v7  ;;  %v1269_v9 = vmul.f32 %v1267_v6, %v1267_v6 }
 0x2fa   : > { %v1268_v10 = vsub.f32 %v4685_v1, %v1266_v8  ;;  %v1271_v11 = vsel %vm1257_vm2, %v1269_v9, 0.0 }
 0x2fb   : > { %1272 = vadd.xlane.f32.xlu1 %v1271_v11 }
 0x2fc   : > { %v1270_v12 = vmul.f32 %v1268_v10, %v1268_v10 }
 0x2fe   : > { %v1274_v13 = vsel %vm1257_vm2, %v1270_v12, 0.0 }
 0x2ff   : > { %1275 = vadd.xlane.f32.xlu1 %v1274_v13 }
 0x384   : > { %v1273_v18 = vpop.xlane.xlu1 %1272 }
 0x385   : > { %v1277_v19 = vmul.f32 0.03125, %v1273_v18 }
 0x387   : > { %v1279_v20 = vadd.f32 1e-05, %v1277_v19 }
 0x388   : > { %v1276_v21 = vpop.xlane.xlu1 %1275 }
 0x389   : > { %4172 = vrsqrt.f32 %v1279_v20  ;;  %v1278_v22 = vmul.f32 0.03125, %v1276_v21 }
 0x38b   : > { %v1280_v23 = vadd.f32 1e-05, %v1278_v22 }
 0x38d   : > { %4174 = vrsqrt.f32 %v1280_v23 }
 0x396   : > { %v4173_v24 = vpop.eup %4172 }
 0x397   : > { %v1283_v26 = vmul.f32 %v4173_v24, %v1267_v6 }
 0x399   : > { %v1291_v28 = vmul.f32 %v3730_v25, %v1283_v26 }
 0x39a   : > { %v4175_v29 = vpop.eup %4174 }
 0x39b   : > { %v1284_v30 = vmul.f32 %v4175_v29, %v1268_v10  ;;  %v1299_v31 = vadd.f32 %v3731_v27, %v1291_v28 }
 0x39d   : > { %v1292_v32 = vmul.f32 %v3730_v25, %v1284_v30  ;;  %3889 = vmatprep.mubr.msk.f32.mxu0 %vm1257_vm2, %v1299_v31 }
 0x39f   : > { %v1300_v33 = vadd.f32 %v3731_v27, %v1292_v32 }
 0x3a1   : > { %3890 = vmatmul.mubr.msk.f32.vlgmr.msra.gmra.mxu0 %vm1257_vm2, %v1300_v33 }
 0x3a2   : > { %3894 = vmatprep.mubr.msk.f32.mxu0 %vm4276_vm3, %v4275_v34 }
 0x461   : > { %v3891_v36 = vpop.f32.mrf.mxu0 }
 0x462   : > { %v4722_v37 = vadd.f32 %v3891_v36, %v3732_v35 }
 0x463   : > { %v1384_v38 = vpop.f32.mrf.mxu0 }
 0x464   : > { %v4724_v39 = vadd.f32 %v3732_v35, %v1384_v38  ;;  %1475 = vrot.lane.b32.xlu1 %v4722_v37, %s4277_s27 }
 0x466   : > { %1397 = vrot.lane.b32.xlu0 %v4724_v39, %s4277_s27  ;;  %s4289_s27 = smov 16  }
 0x4d6   : > { %v1476_v40 = vpop.permute.xlu1 %1475 }
 0x4d7   : > { %3898 = vmatpush3.xpose.msk.msra.mxu1 %vm1399_vm4, %v1476_v40 }
 0x4d8   : > { %v1398_v41 = vpop.permute.xlu0 %1397  ;;  %3907 = vmatprep.subr.mxu1 %v4275_v34 }
 0x4d9   : > { %3893 = vmatpush3.xpose.msk.msra.mxu0 %vm1399_vm4, %v1398_v41 }
 0x4da   : > { %3900 = vmatmul.mubr.msk.f32.vlgmr.msra.gmra.mxu1 %vm1399_vm4, %v4722_v37  ;;  %3902 = vmatprep.subr.mxu0 %v4275_v34 }
 0x4db   : > { %3909 = vmatprep.mubr.msk.f32.mxu1 %vm4276_vm3, %v4275_v34 }
 0x4dc   : > { %3895 = vmatmul.mubr.msk.f32.vlgmr.msra.gmra.mxu0 %vm1399_vm4, %v4724_v39 }
 0x4dd   : > { %3904 = vmatprep.mubr.msk.f32.mxu0 %vm4276_vm3, %v4275_v34 }
 0x59a   : > { %v1547_v44 = vpop.f32.mrf.mxu1 }
 0x59b   : > { %v1552_v45 = vmul.f32 0.35355338, %v1547_v44 }
 0x59c   : > { %v1470_v46 = vpop.f32.mrf.mxu0  ;;  %v3901_v47 = vpop.f32.mrf.mxu1 }
 0x59d   : > { %v1551_v48 = vmul.f32 0.35355338, %v1470_v46  ;;  %v1556_v49 = vsel %vm1395_vm5, %v1552_v45, -1e+30 }
 0x59e   : > { %v3896_v50 = vpop.f32.mrf.mxu0  ;;  %v1560_v51 = vsel %vm1399_vm4, %v1556_v49, -inf }
 0x59f   : > { %1561 = vmax.xlane.f32.xlu0 %v1560_v51  ;;  %v1555_v52 = vsel %vm1395_vm5, %v1551_v48, -1e+30 }
 0x5a0   : > { %v1557_v53 = vsel %vm1399_vm4, %v1555_v52, -inf }
 0x5a1   : > { %1558 = vmax.xlane.f32.xlu1 %v1557_v53 }
 0x628   : > { %v1562_v54 = vpop.xlane.xlu0 %1561 }
 0x629   : > { %v1564_v55 = vsub.f32 %v1556_v49, %v1562_v54 }
 0x62a   : > { %v1559_v56 = vpop.xlane.xlu1 %1558 }
 0x62b   : > { %v1567_v57 = vmul.f32 1.442695, %v1564_v55  ;;  %v1563_v58 = vsub.f32 %v1555_v52, %v1559_v56 }
 0x62d   : > { %4176 = vpow2.f32 %v1567_v57  ;;  %v1565_v59 = vmul.f32 1.442695, %v1563_v58 }
 0x62f   : > { %4178 = vpow2.f32 %v1565_v59 }
 0x63a   : > { %v4177_v60 = vpop.eup %4176 }
 0x63b   : > { %v1572_v61 = vsel %vm1399_vm4, %v4177_v60, 0.0 }
 0x63c   : > { %v4179_v62 = vpop.eup %4178  ;;  %1573 = vadd.xlane.f32.xlu1 %v1572_v61 }
 0x63d   : > { %v1569_v63 = vsel %vm1399_vm4, %v4179_v62, 0.0 }
 0x63e   : > { %1570 = vadd.xlane.f32.xlu0 %v1569_v63 }
 0x64d   : > { %1655 = vrot.lane.b32.xlu1 %v4722_v37, %s4278_s26 }
 0x651   : > { %1733 = vrot.lane.b32.xlu1 %v4724_v39, %s4279_s0 }
 0x654   : > { %1579 = vrot.lane.b32.xlu0 %v4724_v39, %s4278_s26  ;;  %s5098_s26 = sld [smem:[#allocation10_spill]] }
 0x655   : > { %1811 = vrot.lane.b32.xlu1 %v4722_v37, %s4279_s0  ;;  %s4290_s0 = smov 24  }
 0x658   : > { %1731 = vrot.lane.b32.xlu0 %v4724_v39, %s4280_s28 }
 0x659   : > { %1809 = vrot.lane.b32.xlu1 %v4722_v37, %s4280_s28  ;;  %s5103_s28 = scalar_lea.vmem %s5031_s12, %s4452_s4 }
 0x6c5   : > { %v1574_v2 = vpop.xlane.xlu1 %1573 }
 0x6c6   : > { %4180 = vrcp.f32 %v1574_v2 }
 0x6c7   : > { %v1571_v3 = vpop.xlane.xlu0 %1570 }
 0x6c8   : > { %4182 = vrcp.f32 %v1571_v3 }
 0x6c9   : > { %v1656_v4 = vpop.permute.xlu1 %1655 }
 0x6ca   : > { %3908 = vmatpush3.msra.mxu1 %v1656_v4 }
 0x6cb   : > { %v1580_v5 = vpop.permute.xlu0 %1579  ;;  %3917 = vmatprep.subr.mxu1 %v4275_v34 }
 0x6cc   : > { %3903 = vmatpush3.msra.mxu0 %v1580_v5 }
 0x6cd   : > { %v1734_v6 = vpop.permute.xlu1 %1733  ;;  %3912 = vmatprep.subr.mxu0 %v4275_v34 }
 0x6cf   : > { %v1732_v13 = vpop.permute.xlu0 %1731 }
 0x6d1   : > { %v1812_v8 = vpop.permute.xlu1 %1811 }
 0x6d3   : > { %v4181_v7 = vpop.eup %4180 }
 0x6d4   : > { %v1578_v9 = vmul.f32 %v4181_v7, %v4177_v60 }
 0x6d5   : > { %v4183_v10 = vpop.eup %4182  ;;  %v1810_v12 = vpop.permute.xlu1 %1809 }
 0x6d6   : > { %3910 = vmatmul.mubr.msk.f32.vlgmr.msra.gmra.mxu1 %vm1399_vm4, %v1578_v9  ;;  %v1577_v11 = vmul.f32 %v4183_v10, %v4179_v62 }
 0x6d7   : > { %3918 = vmatpush3.xpose.msk.msra.mxu1 %vm1399_vm4, %v1812_v8  ;;  %3919 = vmatprep.mubr.msk.f32.mxu1 %vm4276_vm3, %v4275_v34 }
 0x6d8   : > { %3905 = vmatmul.mubr.msk.f32.vlgmr.msra.gmra.mxu0 %vm1399_vm4, %v1577_v11  ;;  %3927 = vmatprep.subr.mxu1 %v4275_v34 }
 0x6d9   : > { %3913 = vmatpush3.xpose.msk.msra.mxu0 %vm1399_vm4, %v1734_v6  ;;  %3914 = vmatprep.mubr.msk.f32.mxu0 %vm4276_vm3, %v4275_v34 }
 0x6da   : > { %3920 = vmatmul.mubr.msk.f32.vlgmr.msra.gmra.mxu1 %vm1399_vm4, %v1810_v12  ;;  %3922 = vmatprep.subr.mxu0 %v4275_v34 }
 0x6db   : > { %3929 = vmatprep.mubr.msk.f32.mxu1 %vm4276_vm3, %v4275_v34 }
 0x6dc   : > { %3915 = vmatmul.mubr.msk.f32.vlgmr.msra.gmra.mxu0 %vm1399_vm4, %v1732_v13 }
 0x6dd   : > { %3924 = vmatprep.mubr.msk.f32.mxu0 %vm4276_vm3, %v4275_v34 }
 0x796   : > { %v4775_v14 = vpop.f32.mrf.mxu1 }
 0x798   : > { %v4777_v15 = vpop.f32.mrf.mxu0  ;;  %v3911_v16 = vpop.f32.mrf.mxu1 }
 0x79a   : > { %v3906_v17 = vpop.f32.mrf.mxu0  ;;  %v1883_v18 = vpop.f32.mrf.mxu1 }
 0x79b   : > { %v1888_v19 = vmul.f32 0.35355338, %v1883_v18 }
 0x79c   : > { %v1805_v20 = vpop.f32.mrf.mxu0  ;;  %v3921_v21 = vpop.f32.mrf.mxu1 }
 0x79d   : > { %v1887_v22 = vmul.f32 0.35355338, %v1805_v20  ;;  %v1890_v23 = vsel %vm1395_vm5, %v1888_v19, -1e+30 }
 0x79e   : > { %v3916_v24 = vpop.f32.mrf.mxu0  ;;  %v1894_v25 = vsel %vm1399_vm4, %v1890_v23, -inf }
 0x79f   : > { %1895 = vmax.xlane.f32.xlu1 %v1894_v25  ;;  %v1889_v26 = vsel %vm1395_vm5, %v1887_v22, -1e+30 }
 0x7a0   : > { %v1891_v27 = vsel %vm1399_vm4, %v1889_v26, -inf }
 0x7a1   : > { %1892 = vmax.xlane.f32.xlu0 %v1891_v27 }
 0x7b0   : > { %1989 = vrot.lane.b32.xlu1 %v4722_v37, %s4281_s7 }
 0x7b4   : > { %2067 = vrot.lane.b32.xlu1 %v4724_v39, %s4282_s25 }
 0x7b8   : > { %2145 = vrot.lane.b32.xlu1 %v4722_v37, %s4282_s25  ;;  %s5099_s25 = sld [smem:[#allocation21_spill]] }
 0x7bc   : > { %2143 = vrot.lane.b32.xlu1 %v4722_v37, %s4283_s24 }
 0x828   : > { %v1896_v28 = vpop.xlane.xlu1 %1895 }
 0x829   : > { %v1898_v29 = vsub.f32 %v1890_v23, %v1896_v28 }
 0x82a   : > { %v1893_v30 = vpop.xlane.xlu0 %1892 }
 0x82b   : > { %v1901_v31 = vmul.f32 1.442695, %v1898_v29  ;;  %v1897_v32 = vsub.f32 %v1889_v26, %v1893_v30 }
 0x82c   : > { %v1990_v33 = vpop.permute.xlu1 %1989 }
 0x82d   : > { %4184 = vpow2.f32 %v1901_v31  ;;  %v1899_v35 = vmul.f32 1.442695, %v1897_v32  ;;  %3928 = vmatpush3.msra.mxu1 %v1990_v33 }
 0x82e   : > { %3937 = vmatprep.subr.mxu1 %v4275_v34 }
 0x82f   : > { %4186 = vpow2.f32 %v1899_v35 }
 0x830   : > { %v2068_v45 = vpop.permute.xlu1 %2067 }
 0x834   : > { %v2146_v48 = vpop.permute.xlu1 %2145 }
 0x838   : > { %v2144_v52 = vpop.permute.xlu1 %2143 }
 0x83a   : > { %v4185_v36 = vpop.eup %4184 }
 0x83b   : > { %v1906_v38 = vsel %vm1399_vm4, %v4185_v36, 0.0 }
 0x83c   : > { %v4187_v40 = vpop.eup %4186  ;;  %1907 = vadd.xlane.f32.xlu0 %v1906_v38 }
 0x83d   : > { %v1903_v41 = vsel %vm1399_vm4, %v4187_v40, 0.0 }
 0x840   : > { %1904 = vadd.xlane.f32.xlu0 %v1903_v41 }
 0x856   : > { %1913 = vrot.lane.b32.xlu0 %v4724_v39, %s4281_s7  ;;  %s5104_s7 = scalar_lea.vmem %s5033_s14, %s4452_s4 }
 0x85a   : > { %2065 = vrot.lane.b32.xlu0 %v4724_v39, %s4283_s24  ;;  %s5100_s24 = scalar_lea.vmem %s5099_s25, %s4452_s4 }
 0x8c5   : > { %v1908_v42 = vpop.xlane.xlu0 %1907 }
 0x8c6   : > { %4188 = vrcp.f32 %v1908_v42 }
 0x8c9   : > { %v1905_v44 = vpop.xlane.xlu0 %1904 }
 0x8ca   : > { %4190 = vrcp.f32 %v1905_v44 }
 0x8cd   : > { %v1914_v46 = vpop.permute.xlu0 %1913 }
 0x8ce   : > { %3923 = vmatpush3.msra.mxu0 %v1914_v46 }
 0x8cf   : > { %3932 = vmatprep.subr.mxu0 %v4275_v34 }
 0x8d1   : > { %v2066_v53 = vpop.permute.xlu0 %2065 }
 0x8d3   : > { %v4189_v47 = vpop.eup %4188 }
 0x8d4   : > { %v1912_v49 = vmul.f32 %v4189_v47, %v4185_v36 }
 0x8d6   : > { %3930 = vmatmul.mubr.msk.f32.vlgmr.msra.gmra.mxu1 %vm1399_vm4, %v1912_v49 }
 0x8d7   : > { %v4191_v50 = vpop.eup %4190  ;;  %3938 = vmatpush3.xpose.msk.msra.mxu1 %vm1399_vm4, %v2146_v48  ;;  %3939 = vmatprep.mubr.msk.f32.mxu1 %vm4276_vm3, %v4275_v34 }
 0x8d8   : > { %v1911_v51 = vmul.f32 %v4191_v50, %v4187_v40  ;;  %3947 = vmatprep.subr.mxu1 %v4275_v34 }
 0x8da   : > { %3925 = vmatmul.mubr.msk.f32.vlgmr.msra.gmra.mxu0 %vm1399_vm4, %v1911_v51  ;;  %3940 = vmatmul.mubr.msk.f32.vlgmr.msra.gmra.mxu1 %vm1399_vm4, %v2144_v52 }
 0x8db   : > { %3933 = vmatpush3.xpose.msk.msra.mxu0 %vm1399_vm4, %v2068_v45  ;;  %3934 = vmatprep.mubr.msk.f32.mxu0 %vm4276_vm3, %v4275_v34 }
 0x8dc   : > { %3942 = vmatprep.subr.mxu0 %v4275_v34  ;;  %3949 = vmatprep.mubr.msk.f32.mxu1 %vm4276_vm3, %v4275_v34 }
 0x8de   : > { %3935 = vmatmul.mubr.msk.f32.vlgmr.msra.gmra.mxu0 %vm1399_vm4, %v2066_v53 }
 0x8df   : > { %3944 = vmatprep.mubr.msk.f32.mxu0 %vm4276_vm3, %v4275_v34 }
 0x996   : > { %v4811_v54 = vpop.f32.mrf.mxu1 }
 0x998   : > { %v3931_v55 = vpop.f32.mrf.mxu1 }
 0x99a   : > { %v4813_v56 = vpop.f32.mrf.mxu0  ;;  %v2217_v57 = vpop.f32.mrf.mxu1 }
 0x99b   : > { %v2222_v58 = vmul.f32 0.35355338, %v2217_v57 }
 0x99c   : > { %v3926_v59 = vpop.f32.mrf.mxu0  ;;  %v3941_v60 = vpop.f32.mrf.mxu1 }
 0x99d   : > { %v2224_v61 = vsel %vm1395_vm5, %v2222_v58, -1e+30 }
 0x99e   : > { %v2139_v62 = vpop.f32.mrf.mxu0  ;;  %v2228_v63 = vsel %vm1399_vm4, %v2224_v61, -inf }
 0x99f   : > { %v2221_v2 = vmul.f32 0.35355338, %v2139_v62  ;;  %2229 = vmax.xlane.f32.xlu1 %v2228_v63  ;;  %v2768_v63 = vld [vmem:[%s5098_s26 + $0x18] sm:$0xff] }
 0x9a0   : > { %v3936_v3 = vpop.f32.mrf.mxu0 }
 0x9a1   : > { %v2223_v4 = vsel %vm1395_vm5, %v2221_v2, -1e+30  ;;  %v2766_v2 = vld [vmem:[%s5098_s26 + $0x8] sm:$0xff]  ;;  %v2765_v3 = vld [vmem:[%s5098_s26] sm:$0xff] }
 0x9a2   : > { %v2225_v5 = vsel %vm1399_vm4, %v2223_v4, -inf }
 0x9a3   : > { %2226 = vmax.xlane.f32.xlu0 %v2225_v5 }
 0x9b0   : > { %2323 = vrot.lane.b32.xlu1 %v4722_v37, %s4284_s2 }
 0x9b4   : > { %2401 = vrot.lane.b32.xlu1 %v4724_v39, %s4285_s13 }
 0x9b8   : > { %2479 = vrot.lane.b32.xlu1 %v4722_v37, %s4285_s13 }
 0x9bc   : > { %2477 = vrot.lane.b32.xlu1 %v4722_v37, %s4286_s3 }
 0xa28   : > { %v2230_v6 = vpop.xlane.xlu1 %2229 }
 0xa29   : > { %v2232_v7 = vsub.f32 %v2224_v61, %v2230_v6 }
 0xa2b   : > { %v2235_v8 = vmul.f32 1.442695, %v2232_v7 }
 0xa2c   : > { %v2324_v9 = vpop.permute.xlu1 %2323  ;;  %v2227_v10 = vpop.xlane.xlu0 %2226 }
 0xa2d   : > { %4192 = vpow2.f32 %v2235_v8  ;;  %v2231_v11 = vsub.f32 %v2223_v4, %v2227_v10  ;;  %3948 = vmatpush3.msra.mxu1 %v2324_v9 }
 0xa2e   : > { %3957 = vmatprep.subr.mxu1 %v4275_v34 }
 0xa2f   : > { %v2233_v12 = vmul.f32 1.442695, %v2231_v11 }
 0xa30   : > { %v2402_v21 = vpop.permute.xlu1 %2401 }
 0xa31   : > { %4194 = vpow2.f32 %v2233_v12 }
 0xa34   : > { %v2480_v24 = vpop.permute.xlu1 %2479 }
 0xa38   : > { %v2478_v28 = vpop.permute.xlu1 %2477 }
 0xa3a   : > { %v4193_v13 = vpop.eup %4192 }
 0xa3b   : > { %v2240_v16 = vsel %vm1399_vm4, %v4193_v13, 0.0 }
 0xa3c   : > { %2241 = vadd.xlane.f32.xlu0 %v2240_v16 }
 0xa3e   : > { %v4195_v17 = vpop.eup %4194 }
 0xa3f   : > { %v2237_v18 = vsel %vm1399_vm4, %v4195_v17, 0.0 }
 0xa40   : > { %2238 = vadd.xlane.f32.xlu0 %v2237_v18 }
 0xa56   : > { %2247 = vrot.lane.b32.xlu0 %v4724_v39, %s4284_s2  ;;  %s5101_s2 = scalar_lea.vmem %s5036_s17, %s4452_s4 }
 0xa5a   : > { %2399 = vrot.lane.b32.xlu0 %v4724_v39, %s4286_s3 }
 0xac5   : > { %v2242_v19 = vpop.xlane.xlu0 %2241 }
 0xac6   : > { %4196 = vrcp.f32 %v2242_v19 }
 0xac9   : > { %v2239_v20 = vpop.xlane.xlu0 %2238 }
 0xaca   : > { %4198 = vrcp.f32 %v2239_v20 }
 0xacd   : > { %v2248_v22 = vpop.permute.xlu0 %2247 }
 0xace   : > { %3943 = vmatpush3.msra.mxu0 %v2248_v22  ;;  %v3759_v22 = vld [vmem:[%s5100_s24] ss:$0 sm:$0xff] }
 0xacf   : > { %3952 = vmatprep.subr.mxu0 %v4275_v34 }
 0xad1   : > { %v2400_v29 = vpop.permute.xlu0 %2399 }
 0xad3   : > { %v4197_v23 = vpop.eup %4196 }
 0xad4   : > { %v2246_v25 = vmul.f32 %v4197_v23, %v4193_v13 }
 0xad6   : > { %3950 = vmatmul.mubr.msk.f32.vlgmr.msra.gmra.mxu1 %vm1399_vm4, %v2246_v25 }
 0xad7   : > { %v4199_v26 = vpop.eup %4198  ;;  %3958 = vmatpush3.xpose.msk.msra.mxu1 %vm1399_vm4, %v2480_v24  ;;  %3959 = vmatprep.mubr.msk.f32.mxu1 %vm4276_vm3, %v4275_v34 }
 0xad8   : > { %v2245_v27 = vmul.f32 %v4199_v26, %v4195_v17  ;;  %3967 = vmatprep.subr.mxu1 %v4275_v34 }
 0xada   : > { %3945 = vmatmul.mubr.msk.f32.vlgmr.msra.gmra.mxu0 %vm1399_vm4, %v2245_v27  ;;  %3960 = vmatmul.mubr.msk.f32.vlgmr.msra.gmra.mxu1 %vm1399_vm4, %v2478_v28 }
 0xadb   : > { %3953 = vmatpush3.xpose.msk.msra.mxu0 %vm1399_vm4, %v2402_v21  ;;  %3954 = vmatprep.mubr.msk.f32.mxu0 %vm4276_vm3, %v4275_v34 }
 0xadc   : > { %3962 = vmatprep.subr.mxu0 %v4275_v34  ;;  %3969 = vmatprep.mubr.msk.f32.mxu1 %vm4276_vm3, %v4275_v34 }
 0xade   : > { %3955 = vmatmul.mubr.msk.f32.vlgmr.msra.gmra.mxu0 %vm1399_vm4, %v2400_v29 }
 0xadf   : > { %3964 = vmatprep.mubr.msk.f32.mxu0 %vm4276_vm3, %v4275_v34 }
 0xb96   : > { %v2395_v30 = vpop.f32.mrf.mxu1 }
 0xb98   : > { %v3951_v31 = vpop.f32.mrf.mxu1 }
 0xb9a   : > { %v2319_v32 = vpop.f32.mrf.mxu0  ;;  %v2551_v33 = vpop.f32.mrf.mxu1 }
 0xb9b   : > { %v2556_v35 = vmul.f32 0.35355338, %v2551_v33 }
 0xb9c   : > { %v3946_v36 = vpop.f32.mrf.mxu0  ;;  %v3961_v38 = vpop.f32.mrf.mxu1 }
 0xb9d   : > { %v2558_v40 = vsel %vm1395_vm5, %v2556_v35, -1e+30 }
 0xb9e   : > { %v2473_v41 = vpop.f32.mrf.mxu0  ;;  %v2562_v42 = vsel %vm1399_vm4, %v2558_v40, -inf }
 0xb9f   : > { %v2555_v44 = vmul.f32 0.35355338, %v2473_v41  ;;  %2563 = vmax.xlane.f32.xlu1 %v2562_v42  ;;  %v3117_v41 = vld [vmem:[%s4492_s8 + $0x18] sm:$0xff]  ;;  %v2905_v42 = vld [vmem:[%s4519_s9 + $0x10] sm:$0xff] }
 0xba0   : > { %v3956_v45 = vpop.f32.mrf.mxu0 }
 0xba1   : > { %v2557_v46 = vsel %vm1395_vm5, %v2555_v44, -1e+30  ;;  %v3116_v44 = vld [vmem:[%s4492_s8 + $0x10] sm:$0xff]  ;;  %v2904_v45 = vld [vmem:[%s4519_s9 + $0x8] sm:$0xff] }
 0xba2   : > { %v2559_v34 = vsel %vm1399_vm4, %v2557_v46, -inf }
 0xba3   : > { %2560 = vmax.xlane.f32.xlu0 %v2559_v34  ;;  %v2903_v34 = vld [vmem:[%s4519_s9] sm:$0xff] }
 0xbb0   : > { %2657 = vrot.lane.b32.xlu1 %v4722_v37, %s4287_s30 }
 0xbb4   : > { %2735 = vrot.lane.b32.xlu1 %v4813_v56, %s4288_s21 }
 0xbb8   : > { %2737 = vrot.lane.b32.xlu1 %v4811_v54, %s4288_s21 }
 0xbbc   : > { %2745 = vrot.lane.b32.xlu1 %v2395_v30, %s4289_s27 }
 0xc28   : > { %v2564_v47 = vpop.xlane.xlu1 %2563 }
 0xc29   : > { %v2566_v48 = vsub.f32 %v2558_v40, %v2564_v47  ;;  %v2906_v40 = vld [vmem:[%s4519_s9 + $0x18] sm:$0xff]  ;;  %v3114_v47 = vld [vmem:[%s4492_s8] sm:$0xff] }
 0xc2b   : > { %v2569_v49 = vmul.f32 1.442695, %v2566_v48  ;;  %v3004_v48 = vld [vmem:[%s4533_s15 + $0x38] sm:$0xff] }
 0xc2c   : > { %v2658_v50 = vpop.permute.xlu1 %2657  ;;  %v2561_v51 = vpop.xlane.xlu0 %2560 }
 0xc2d   : > { %4200 = vpow2.f32 %v2569_v49  ;;  %v2565_v43 = vsub.f32 %v2557_v46, %v2561_v51  ;;  %3968 = vmatpush3.msra.mxu1 %v2658_v50  ;;  %v3115_v46 = vld [vmem:[%s4492_s8 + $0x8] sm:$0xff] }
 0xc2e   : > { %4013 = vmatprep.subr.mxu1 %v3117_v41 }
 0xc2f   : > { %v2567_v52 = vmul.f32 1.442695, %v2565_v43 }
 0xc30   : > { %v2736_v8 = vpop.permute.xlu1 %2735 }
 0xc31   : > { %4202 = vpow2.f32 %v2567_v52  ;;  %v2757_v12 = vsel %vm1399_vm4, %v4777_v15, %v2736_v8  ;;  %v3001_v8 = vld [vmem:[%s4533_s15 + $0x20] sm:$0xff] }
 0xc34   : > { %v2738_v9 = vpop.permute.xlu1 %2737 }
 0xc35   : > { %v2758_v16 = vsel %vm1399_vm4, %v4775_v14, %v2738_v9  ;;  %v3000_v9 = vld [vmem:[%s4533_s15 + $0x18] sm:$0xff] }
 0xc38   : > { %v2746_v10 = vpop.permute.xlu1 %2745 }
 0xc39   : > { %v2761_v19 = vsel %vm2759_vm6, %v2758_v16, %v2746_v10  ;;  %v2999_v10 = vld [vmem:[%s4533_s15 + $0x10] sm:$0xff] }
 0xc3a   : > { %v4201_v53 = vpop.eup %4200  ;;  %v3236_v16 = vld [vmem:[%s4502_s10 + $0x70] sm:$0xff] }
 0xc3b   : > { %v2574_v37 = vsel %vm1399_vm4, %v4201_v53, 0.0 }
 0xc3c   : > { %2575 = vadd.xlane.f32.xlu0 %v2574_v37 }
 0xc3e   : > { %v4203_v55 = vpop.eup %4202 }
 0xc3f   : > { %v2571_v56 = vsel %vm1399_vm4, %v4203_v55, 0.0 }
 0xc40   : > { %2572 = vadd.xlane.f32.xlu0 %v2571_v56 }
 0xc56   : > { %2581 = vrot.lane.b32.xlu0 %v4724_v39, %s4287_s30  ;;  %v2767_v39 = vld [vmem:[%s5098_s26 + $0x10] sm:$0xff]  ;;  %s5102_s30 = scalar_lea.vmem %s5030_s11, %s4452_s4 }
 0xc57   : > { %v3770_v56 = vld [vmem:[%s5102_s30] ss:$0 sm:$0xff] }
 0xc5a   : > { %2743 = vrot.lane.b32.xlu0 %v2319_v32, %s4289_s27 }
 0xcc5   : > { %v2576_v54 = vpop.xlane.xlu0 %2575 }
 0xcc6   : > { %4204 = vrcp.f32 %v2576_v54 }
 0xcc9   : > { %v2573_v57 = vpop.xlane.xlu0 %2572 }
 0xcca   : > { %4206 = vrcp.f32 %v2573_v57  ;;  %v3763_v57 = vld [vmem:[%s1071_s6] ss:$0 sm:$0xff] }
 0xccd   : > { %v2582_v58 = vpop.permute.xlu0 %2581 }
 0xcce   : > { %3963 = vmatpush3.msra.mxu0 %v2582_v58  ;;  %v3771_v58 = vld [vmem:[%s5103_s28] ss:$0 sm:$0xff] }
 0xccf   : > { %3972 = vmatprep.subr.mxu0 %v2768_v63 }
 0xcd1   : > { %v2744_v11 = vpop.permute.xlu0 %2743 }
 0xcd2   : > { %v2760_v17 = vsel %vm2759_vm6, %v2757_v12, %v2744_v11  ;;  %v2998_v11 = vld [vmem:[%s4533_s15 + $0x8] sm:$0xff]  ;;  %v2997_v12 = vld [vmem:[%s4533_s15] sm:$0xff] }
 0xcd3   : > { %v4205_v59 = vpop.eup %4204 }
 0xcd4   : > { %v2580_v60 = vmul.f32 %v4205_v59, %v4201_v53 }
 0xcd6   : > { %3970 = vmatmul.mubr.msk.f32.vlgmr.msra.gmra.mxu1 %vm1399_vm4, %v2580_v60 }
 0xcd7   : > { %v4207_v61 = vpop.eup %4206  ;;  %4014 = vmatpush3.msra.mxu1 %v3117_v41 }
 0xcd8   : > { %v2579_v62 = vmul.f32 %v4207_v61, %v4203_v55  ;;  %4015 = vmatprep.subr.mxu1 %v3116_v44  ;;  %v3762_v55 = vld [vmem:[%s5101_s2] ss:$0 sm:$0xff]  ;;  %s5105_s2 = scalar_lea.vmem %s5035_s16, %s4452_s4  ;;  %s5106_s4 = sld [smem:[#allocation6_spill]] }
 0xcd9   : > { %4016 = vmatpush3.msra.mxu1 %v3116_v44 }
 0xcda   : > { %3965 = vmatmul.mubr.msk.f32.vlgmr.msra.gmra.mxu0 %vm1399_vm4, %v2579_v62  ;;  %4017 = vmatprep.subr.mxu1 %v3115_v46 }
 0xcdb   : > { %3973 = vmatpush3.msra.mxu0 %v2768_v63  ;;  %4018 = vmatpush3.msra.mxu1 %v3115_v46 }
 0xcdc   : > { %3974 = vmatprep.subr.mxu0 %v2767_v39  ;;  %4019 = vmatprep.subr.mxu1 %v3114_v47 }
 0xcdd   : > { %3975 = vmatpush3.msra.mxu0 %v2767_v39  ;;  %4020 = vmatpush3.msra.mxu1 %v3114_v47 }
 0xcde   : > { %3976 = vmatprep.subr.mxu0 %v2766_v2  ;;  %p3778_p6 = scmp.ne.s32.totalorder %s5106_s4, 1 }
 0xcdf   : > { %3977 = vmatpush3.msra.mxu0 %v2766_v2  ;;  %s5107_s3 = sld [smem:[#allocation27_spill]] (!%p3778_p6) }
 0xce0   : > { %3978 = vmatprep.subr.mxu0 %v2765_v3  ;;  %s5109_s25 = sld [smem:[#allocation25_spill]] (!%p3778_p6) }
 0xce1   : > { %3979 = vmatpush3.msra.mxu0 %v2765_v3 }
 0xce2   : > { %3983 = vmatprep.subr.mxu0 %v2906_v40 }
 0xce5   : > { %s5108_s30 = smov (!%p3778_p6), %s5107_s3 }
 0xd96   : > { %v2729_v4 = vpop.f32.mrf.mxu1 }
 0xd97   : > { %2753 = vrot.lane.b32.xlu1 %v2729_v4, %s4290_s0 }
 0xd98   : > { %v3971_v5 = vpop.f32.mrf.mxu1 }
 0xd9a   : > { %v2653_v6 = vpop.f32.mrf.mxu0 }
 0xd9b   : > { %2751 = vrot.lane.b32.xlu0 %v2653_v6, %s4290_s0  ;;  %v3003_v6 = vld [vmem:[%s4533_s15 + $0x30] sm:$0xff] }
 0xd9c   : > { %v3966_v7 = vpop.f32.mrf.mxu0 }
 0xd9d   : > { %v3002_v7 = vld [vmem:[%s4533_s15 + $0x28] sm:$0xff] }
 0xe09   : > { %v2754_v13 = vpop.permute.xlu1 %2753 }
 0xe0a   : > { %v2764_v21 = vsel %vm2762_vm7, %v2761_v19, %v2754_v13  ;;  %v3237_v13 = vld [vmem:[%s4502_s10 + $0x78] sm:$0xff] }
 0xe0b   : > { %4024 = vmatprep.subr.mxu1 %v3237_v13  ;;  %v3233_v19 = vld [vmem:[%s4502_s10 + $0x58] sm:$0xff] }
 0xe0d   : > { %v2752_v18 = vpop.permute.xlu0 %2751 }
 0xe0e   : > { %v2763_v20 = vsel %vm2762_vm7, %v2760_v17, %v2752_v18  ;;  %v3235_v17 = vld [vmem:[%s4502_s10 + $0x68] sm:$0xff]  ;;  %v3234_v18 = vld [vmem:[%s4502_s10 + $0x60] sm:$0xff] }
 0xe0f   : > { %3980 = vmatprep.mubr.msk.f32.mxu0 %vm1257_vm2, %v2763_v20  ;;  %v3232_v20 = vld [vmem:[%s4502_s10 + $0x50] sm:$0xff] }
 0xe10   : > { %3981 = vmatmul.mubr.msk.f32.vlgmr.msra.gmra.mxu0 %vm1257_vm2, %v2764_v21  ;;  %v3231_v21 = vld [vmem:[%s4502_s10 + $0x48] sm:$0xff] }
 0xe11   : > { %3984 = vmatpush3.msra.mxu0 %v2906_v40 }
 0xe12   : > { %3985 = vmatprep.subr.mxu0 %v2905_v42 }
 0xe13   : > { %3986 = vmatpush3.msra.mxu0 %v2905_v42 }
 0xe14   : > { %3987 = vmatprep.subr.mxu0 %v2904_v45 }
 0xe15   : > { %3988 = vmatpush3.msra.mxu0 %v2904_v45 }
 0xe16   : > { %3989 = vmatprep.subr.mxu0 %v2903_v34 }
 0xe17   : > { %3990 = vmatpush3.msra.mxu0 %v2903_v34 }
 0xe18   : > { %3994 = vmatprep.subr.mxu0 %v3004_v48 }
 0xed0   : > { %v3982_v15 = vpop.f32.mrf.mxu0 }
 0xed1   : > { %v2854_v23 = vadd.f32 %v3982_v15, %v3759_v22  ;;  %v3229_v15 = vld [vmem:[%s4502_s10 + $0x38] sm:$0xff] }
 0xed2   : > { %v2848_v24 = vpop.f32.mrf.mxu0 }
 0xed3   : > { %v4877_v25 = vadd.f32 %v2854_v23, %v4685_v1  ;;  %v2849_v14 = vadd.f32 %v3759_v22, %v2848_v24  ;;  %v3230_v22 = vld [vmem:[%s4502_s10 + $0x40] sm:$0xff]  ;;  %v3228_v23 = vld [vmem:[%s4502_s10 + $0x30] sm:$0xff]  ;;  %v3227_v24 = vld [vmem:[%s4502_s10 + $0x28] sm:$0xff] }
 0xed5   : > { %v4880_v26 = vadd.f32 %v2849_v14, %v4683_v0  ;;  %v2864_v27 = vsel %vm1257_vm2, %v4877_v25, 0.0  ;;  %v3226_v14 = vld [vmem:[%s4502_s10 + $0x20] sm:$0xff] }
 0xed6   : > { %2865 = vadd.xlane.f32.xlu1 %v2864_v27  ;;  %v3225_v27 = vld [vmem:[%s4502_s10 + $0x18] sm:$0xff] }
 0xed7   : > { %v2861_v28 = vsel %vm1257_vm2, %v4880_v26, 0.0 }
 0xed8   : > { %2862 = vadd.xlane.f32.xlu0 %v2861_v28  ;;  %v3224_v28 = vld [vmem:[%s4502_s10 + $0x10] sm:$0xff] }
 0xf5f   : > { %v2866_v29 = vpop.xlane.xlu1 %2865 }
 0xf60   : > { %v2868_v30 = vmul.f32 0.03125, %v2866_v29  ;;  %v3223_v29 = vld [vmem:[%s4502_s10 + $0x8] sm:$0xff] }
 0xf61   : > { %v2863_v1 = vpop.xlane.xlu0 %2862 }
 0xf62   : > { %v2867_v31 = vmul.f32 0.03125, %v2863_v1  ;;  %v2870_v32 = vsub.f32 %v4877_v25, %v2868_v30  ;;  %v3222_v30 = vld [vmem:[%s4502_s10] sm:$0xff] }
 0xf63   : > { %v3772_v1 = vld [vmem:[%s5104_s7] ss:$0 sm:$0xff] }
 0xf64   : > { %v2869_v0 = vsub.f32 %v4880_v26, %v2867_v31  ;;  %v2872_v36 = vmul.f32 %v2870_v32, %v2870_v32  ;;  %v3764_v31 = vld [vmem:[%s1079_s5] ss:$0 sm:$0xff]  ;;  %s5110_s5 = sld [smem:[#allocation26_spill]] (!%p3778_p6) }
 0xf66   : > { %v2871_v33 = vmul.f32 %v2869_v0, %v2869_v0  ;;  %v2876_v38 = vsel %vm1257_vm2, %v2872_v36, 0.0 }
 0xf68   : > { %v2873_v35 = vsel %vm1257_vm2, %v2871_v33, 0.0 }
 0xf69   : > { %2874 = vadd.xlane.f32.xlu0 %v2873_v35 }
 0xf6d   : > { %2877 = vadd.xlane.f32.xlu0 %v2876_v38 }
 0xff2   : > { %v2875_v49 = vpop.xlane.xlu0 %2874 }
 0xff3   : > { %v2879_v50 = vmul.f32 0.03125, %v2875_v49 }
 0xff5   : > { %v2881_v51 = vadd.f32 1e-05, %v2879_v50 }
 0xff6   : > { %v2878_v43 = vpop.xlane.xlu0 %2877 }
 0xff7   : > { %4208 = vrsqrt.f32 %v2881_v51  ;;  %v2880_v52 = vmul.f32 0.03125, %v2878_v43 }
 0xff9   : > { %v2882_v53 = vadd.f32 1e-05, %v2880_v52 }
 0xffb   : > { %4210 = vrsqrt.f32 %v2882_v53 }
0x1004   : > { %v4209_v37 = vpop.eup %4208 }
0x1005   : > { %v2885_v54 = vmul.f32 %v4209_v37, %v2869_v0 }
0x1007   : > { %v2893_v59 = vmul.f32 %v3762_v55, %v2885_v54  ;;  %v3104_v60 = vmul.f32 %v3770_v56, %v2885_v54 }
0x1008   : > { %v4211_v61 = vpop.eup %4210 }
0x1009   : > { %v2886_v62 = vmul.f32 %v4211_v61, %v2870_v32  ;;  %v2901_v63 = vadd.f32 %v3763_v57, %v2893_v59  ;;  %v3112_v39 = vadd.f32 %v3771_v58, %v3104_v60 }
0x100b   : > { %v2894_v2 = vmul.f32 %v3762_v55, %v2886_v62  ;;  %3991 = vmatprep.mubr.msk.f32.mxu0 %vm1257_vm2, %v2901_v63  ;;  %v3105_v3 = vmul.f32 %v3770_v56, %v2886_v62  ;;  %4021 = vmatprep.mubr.msk.f32.mxu1 %vm1257_vm2, %v3112_v39  ;;  %v3767_v56 = vld [vmem:[%s1087_s29] ss:$0 sm:$0xff] }
0x100d   : > { %v2902_v4 = vadd.f32 %v3763_v57, %v2894_v2  ;;  %v3113_v5 = vadd.f32 %v3771_v58, %v3105_v3  ;;  %v3777_v57 = vld [vmem:[%s5105_s2] ss:$0 sm:$0xff] }
0x100f   : > { %3992 = vmatmul.mubr.msk.f32.vlgmr.msra.gmra.mxu0 %vm1257_vm2, %v2902_v4  ;;  %4022 = vmatmul.mubr.msk.f32.vlgmr.msra.gmra.mxu1 %vm1257_vm2, %v3113_v5 }
0x1010   : > { %3995 = vmatpush3.msra.mxu0 %v3004_v48  ;;  %4025 = vmatpush3.msra.mxu1 %v3237_v13 }
0x1011   : > { %3996 = vmatprep.subr.mxu0 %v3003_v6  ;;  %4026 = vmatprep.subr.mxu1 %v3236_v16 }
0x1012   : > { %3997 = vmatpush3.msra.mxu0 %v3003_v6  ;;  %4027 = vmatpush3.msra.mxu1 %v3236_v16 }
0x1013   : > { %3998 = vmatprep.subr.mxu0 %v3002_v7  ;;  %4028 = vmatprep.subr.mxu1 %v3235_v17 }
0x1014   : > { %3999 = vmatpush3.msra.mxu0 %v3002_v7  ;;  %4029 = vmatpush3.msra.mxu1 %v3235_v17 }
0x1015   : > { %4000 = vmatprep.subr.mxu0 %v3001_v8  ;;  %4030 = vmatprep.subr.mxu1 %v3234_v18 }
0x1016   : > { %4001 = vmatpush3.msra.mxu0 %v3001_v8  ;;  %4031 = vmatpush3.msra.mxu1 %v3234_v18 }
0x1017   : > { %4002 = vmatprep.subr.mxu0 %v3000_v9  ;;  %4032 = vmatprep.subr.mxu1 %v3233_v19 }
0x1018   : > { %4003 = vmatpush3.msra.mxu0 %v3000_v9  ;;  %4033 = vmatpush3.msra.mxu1 %v3233_v19 }
0x1019   : > { %4004 = vmatprep.subr.mxu0 %v2999_v10  ;;  %4034 = vmatprep.subr.mxu1 %v3232_v20 }
0x101a   : > { %4005 = vmatpush3.msra.mxu0 %v2999_v10  ;;  %4035 = vmatpush3.msra.mxu1 %v3232_v20 }
0x101b   : > { %4006 = vmatprep.subr.mxu0 %v2998_v11  ;;  %4036 = vmatprep.subr.mxu1 %v3231_v21 }
0x101c   : > { %4007 = vmatpush3.msra.mxu0 %v2998_v11  ;;  %4037 = vmatpush3.msra.mxu1 %v3231_v21 }
0x101d   : > { %4008 = vmatprep.subr.mxu0 %v2997_v12  ;;  %4038 = vmatprep.subr.mxu1 %v3230_v22 }
0x101e   : > { %4009 = vmatpush3.msra.mxu0 %v2997_v12  ;;  %4039 = vmatpush3.msra.mxu1 %v3230_v22 }
0x101f   : > { %4040 = vmatprep.subr.mxu1 %v3229_v15 }
0x1020   : > { %4041 = vmatpush3.msra.mxu1 %v3229_v15 }
0x1021   : > { %4042 = vmatprep.subr.mxu1 %v3228_v23 }
0x1022   : > { %4043 = vmatpush3.msra.mxu1 %v3228_v23 }
0x1023   : > { %4044 = vmatprep.subr.mxu1 %v3227_v24 }
0x1024   : > { %4045 = vmatpush3.msra.mxu1 %v3227_v24 }
0x1025   : > { %4046 = vmatprep.subr.mxu1 %v3226_v14 }
0x1026   : > { %4047 = vmatpush3.msra.mxu1 %v3226_v14 }
0x1027   : > { %4048 = vmatprep.subr.mxu1 %v3225_v27 }
0x1028   : > { %4049 = vmatpush3.msra.mxu1 %v3225_v27 }
0x1029   : > { %4050 = vmatprep.subr.mxu1 %v3224_v28 }
0x102a   : > { %4051 = vmatpush3.msra.mxu1 %v3224_v28 }
0x102b   : > { %4052 = vmatprep.subr.mxu1 %v3223_v29 }
0x102c   : > { %4053 = vmatpush3.msra.mxu1 %v3223_v29 }
0x102d   : > { %4054 = vmatprep.subr.mxu1 %v3222_v30 }
0x102e   : > { %4055 = vmatpush3.msra.mxu1 %v3222_v30 }
0x10cf   : > { %v3993_v32 = vpop.f32.mrf.mxu0  ;;  %v4023_v0 = vpop.f32.mrf.mxu1 }
0x10d0   : > { %v3203_v33 = vadd.f32 %v4023_v0, %v3772_v1  ;;  %v2992_v35 = vadd.f32 %v3993_v32, %v3764_v31 }
0x10d1   : > { %v2986_v36 = vpop.f32.mrf.mxu0  ;;  %v3197_v38 = vpop.f32.mrf.mxu1 }
0x10d2   : > { %v3776_v40 = vmul.f32 -1.702, %v3203_v33  ;;  %v2987_v41 = vadd.f32 %v3764_v31, %v2986_v36  ;;  %v3198_v42 = vadd.f32 %v3772_v1, %v3197_v38  ;;  %v2996_v34 = vmax.f32 %v2992_v35, 0.0 }
0x10d4   : > { %v3212_v44 = vmul.f32 1.442695, %v3776_v40  ;;  %v2995_v45 = vmax.f32 %v2987_v41, 0.0  ;;  %v3775_v46 = vmul.f32 -1.702, %v3198_v42 }
0x10d6   : > { %4212 = vpow2.f32 %v3212_v44  ;;  %v3210_v47 = vmul.f32 1.442695, %v3775_v46  ;;  %4010 = vmatprep.mubr.msk.f32.mxu0 %vm3012_vm8, %v2995_v45 }
0x10d7   : > { %4011 = vmatmul.mubr.msk.f32.vlgmr.msra.gmra.mxu0 %vm3012_vm8, %v2996_v34 }
0x10d8   : > { %4214 = vpow2.f32 %v3210_v47 }
0x10e3   : > { %v4213_v48 = vpop.eup %4212 }
0x10e4   : > { %v3215_v49 = vadd.f32 1.0, %v4213_v48 }
0x10e5   : > { %v4215_v50 = vpop.eup %4214 }
0x10e6   : > { %v3214_v51 = vadd.f32 1.0, %v4215_v50  ;;  %4216 = vrcp.f32 %v3215_v49 }
0x10e8   : > { %4218 = vrcp.f32 %v3214_v51 }
0x10f3   : > { %v4217_v43 = vpop.eup %4216 }
0x10f4   : > { %v3221_v37 = vmul.f32 %v4217_v43, %v3203_v33 }
0x10f5   : > { %v4219_v52 = vpop.eup %4218 }
0x10f6   : > { %v3220_v53 = vmul.f32 %v4219_v52, %v3198_v42 }
0x10f8   : > { %4056 = vmatprep.mubr.f32.mxu1 %v3220_v53 }
0x10f9   : > { %4057 = vmatmul.mubr.f32.vlgmr.msra.gmra.mxu1 %v3221_v37 }
0x1197   : > { %v4012_v55 = vpop.f32.mrf.mxu0 }
0x1198   : > { %v3091_v58 = vadd.f32 %v4012_v55, %v3767_v56 }
0x1199   : > { %v3085_v54 = vpop.f32.mrf.mxu0 }
0x119a   : > { %v3086_v60 = vadd.f32 %v3767_v56, %v3085_v54  ;;  %v3095_v63 = vmul.f32 0.1, %v3091_v58 }
0x119c   : > { %v3094_v3 = vmul.f32 0.1, %v3086_v60 }
0x11b9   : > { %v4058_v59 = vpop.f32.mrf.mxu1 }
0x11ba   : > { %v3317_v61 = vadd.f32 %v4058_v59, %v3777_v57 }
0x11bb   : > { %v3311_v62 = vpop.f32.mrf.mxu1 }
0x11bc   : > { %v3321_v39 = vadd.f32 %v3317_v61, %v4877_v25  ;;  %v3312_v2 = vadd.f32 %v3777_v57, %v3311_v62 }
0x11be   : > { %v3323_v4 = vadd.f32 %v3321_v39, %v3095_v63  ;;  %v3320_v5 = vadd.f32 %v3312_v2, %v4880_v26  ;;  %3329 = sbr.rel (%p3778_p6) target bundleno = 5063 (0x13c7), region = 132 }
0x11c0   : > { %3325 = vst.msk [vmem:[#allocation2 + $0x8] sm:$0xff] %vm1257_vm2, %v3323_v4  ;;  %v3322_v6 = vadd.f32 %v3320_v5, %v3094_v3 }
0x11c2   : > { %3324 = vst.msk [vmem:[#allocation2] sm:$0xff] %vm1257_vm2, %v3322_v6 }
0x11c3   : > { %v3334_v7 = vrot.slane %v3323_v4, 7  ;;  %vm3335_vm9 = vcmask 1041409   ;;  %vm3338_vm10 = vcmask 254976   ;;  %v3387_v20 = vld [vmem:[%s5107_s3 + $0x18] sm:$0xff]  ;;  %v4291_v21 = vmov 0.0   ;;  %v3386_v22 = vld [vmem:[%s5108_s30 + $0x10] sm:$0xff] }
0x11c4   : > { %4059 = vmatprep.subr.mxu0 %v4291_v21  ;;  %vm4292_vm11 = vmmov 0   ;;  %v3385_v15 = vld [vmem:[%s5108_s30 + $0x8] sm:$0xff]  ;;  %v3384_v23 = vld [vmem:[%s5108_s30] sm:$0xff]  ;;  %vm3464_vm12 = vcmask 123904  }
0x11c5   : > { %v3336_v8 = vsel %vm3335_vm9, %v3334_v7, %v3322_v6  ;;  %4067 = vmatprep.mubr.msk.f32.mxu0 %vm4292_vm11, %v4291_v21  ;;  %4060 = vmatpush3.msra.mxu0 %v3387_v20  ;;  %v3779_v1 = vld [vmem:[%s5109_s25] ss:$0 sm:$0xff] }
0x11c6   : > { %v3339_v9 = vsel %vm3338_vm10, %v3336_v8, 0.0  ;;  %4061 = vmatprep.subr.mxu0 %v4291_v21  ;;  %v3780_v33 = vld [vmem:[%s5110_s5] ss:$0 sm:$0xff] }
0x11c7   : > { %3340 = vadd.xlane.f32.xlu0 %v3339_v9  ;;  %4062 = vmatpush3.msra.mxu0 %v3386_v22 }
0x11c8   : > { %4063 = vmatprep.subr.mxu0 %v4291_v21 }
0x11c9   : > { %4064 = vmatpush3.msra.mxu0 %v3385_v15 }
0x11ca   : > { %4065 = vmatprep.subr.mxu0 %v4291_v21 }
0x11cb   : > { %4066 = vmatpush3.msra.mxu0 %v3384_v23 }
0x1250   : > { %v3341_v25 = vpop.xlane.xlu0 %3340 }
0x1251   : > { %v3342_v10 = vmul.f32 0.03125, %v3341_v25 }
0x1253   : > { %v3344_v11 = vrot.slane %v3342_v10, 1  ;;  %v3347_v12 = vsub.f32 %v3322_v6, %v3342_v10 }
0x1255   : > { %v3348_v26 = vsub.f32 %v3323_v4, %v3344_v11  ;;  %v3349_v16 = vmul.f32 %v3347_v12, %v3347_v12 }
0x1257   : > { %v3350_v13 = vmul.f32 %v3348_v26, %v3348_v26 }
0x1259   : > { %v3353_v17 = vrot.slane %v3350_v13, 7 }
0x125b   : > { %v3354_v18 = vsel %vm3335_vm9, %v3353_v17, %v3349_v16 }
0x125c   : > { %v3356_v19 = vsel %vm3338_vm10, %v3354_v18, 0.0 }
0x125d   : > { %3357 = vadd.xlane.f32.xlu0 %v3356_v19 }
0x12e6   : > { %v3358_v24 = vpop.xlane.xlu0 %3357 }
0x12e7   : > { %v3359_v14 = vmul.f32 0.03125, %v3358_v24 }
0x12e9   : > { %v3360_v27 = vadd.f32 1e-05, %v3359_v14 }
0x12eb   : > { %4220 = vrsqrt.f32 %v3360_v27 }
0x12f8   : > { %v4221_v28 = vpop.eup %4220 }
0x12f9   : > { %v3363_v29 = vrot.slane %v4221_v28, 1  ;;  %v3366_v30 = vmul.f32 %v4221_v28, %v3347_v12 }
0x12fb   : > { %v3367_v31 = vmul.f32 %v3363_v29, %v3348_v26  ;;  %v3374_v32 = vmul.f32 %v3779_v1, %v3366_v30 }
0x12fd   : > { %v3375_v0 = vmul.f32 %v3779_v1, %v3367_v31  ;;  %v3382_v36 = vadd.f32 %v3780_v33, %v3374_v32 }
0x12ff   : > { %v3383_v35 = vadd.f32 %v3780_v33, %v3375_v0 }
0x1301   : > { %v3390_v38 = vrot.slane %v3383_v35, 7 }
0x1303   : > { %v3391_v40 = vsel %vm3335_vm9, %v3390_v38, %v3382_v36 }
0x1304   : > { %4068 = vmatmul.mubr.msk.f32.vlgmr.msra.gmra.mxu0 %vm1257_vm2, %v3391_v40 }
0x13c4   : > { %v3460_v41 = vpop.f32.mrf.mxu0 }
0x13c5   : > { %3465 = vst.msk [vmem:[#allocation3] sm:$0x3] %vm3464_vm12, %v3460_v41 }
0x13c6   : > { %v4069_v42 = vpop.f32.mrf.mxu0 }
0x13c7 PF: > { %s5111_s8 = sld [smem:[#allocation8_spill]]  ;;  %s4293_s4 = smov [#allocation3]  }
0x13c8   : > { %s3475_s29 = sshll.u32 %s4293_s4, 4  ;;  %s3476_s29 = int_to_ptr.vmem [resolvable:$true] %s3475_s29 }
0x13c9   : > { %s4222_s13 = scalar_lea.vmem %s3476_s29, 32  ;;  %p4229_p11 = scmp.lt.s32.totalorder %s3476_s29, %s3476_s29 }
0x13ca   : > { %p4223_p8 = scmp.ne.s32.totalorder %s3476_s29, %s4222_s13  ;;  %p4230_p12 = scmp.lt.s32.totalorder %s4222_s13, %s4222_s13 }
0x13cc   : > { %p4231_p13 = por %p4230_p12, %p4229_p11 }
0x13cd   : > { %s5112_s9 = sadd.s32 4294967295, %s5111_s8  }
0x13ce   : > { %p4995_p7 = scmp.eq.s32.totalorder %s5112_s9, 1 }
0x13d0   : > { %p4224_p9 = pnand %p4223_p8, %p4995_p7 }
0x13d2   : > { %p4225_p10 = pneg %p4224_p9 }
0x13d4   : > { %p4232_p0 = pnand %p4231_p13, %p4225_p10 }
0x13d6   : > { %4235 = shalt.err (!%p4232_p0)
}
0x13d7   : > { %s5114_s27 = sld [smem:[#allocation28_spill]] }
0x13dd   : > { %4119 = dma.vmem_to_hbm [thread:$0]  (%p4995_p7), %s3476_s29, 32, %s5114_s27, [#allocation4]  }
0x13de   : > { %4259 = dma.done.wait (%p4995_p7), [#allocation4], 32  }
0x13df   : > { %4261 = vsyncadd (%p4995_p7), [#allocation4], 4294967264 }
0x13e0 PF: > { %s5115_s26 = sld [smem:[#allocation8_spill]] }
0x13e1   : > { %s5116_s27 = sld [smem:[#allocation7_spill]] }
0x13e2   : > { %s5117_s3 = sld [smem:[#allocation9_spill]] }
0x13e6   : > { %s37_s7 = sadd.s32 1, %s5115_s26  }
0x13e7   : > { %p34_p1 = scmp.ge.s32.totalorder %s37_s7, 4  }
0x13e9   :  { %36 = sbr.rel (!%p34_p1) target bundleno = 21 (0x15), region = 214 }
0x13ee   :  { %3488 = vsyncpa [#allocation4], 1 }
0x13ef   :  { %3490 = vsyncpa [#allocation4 + $0x1], 1 }

</bundles_post_ra>
